<compile_context>
chip_gen: v6e
topology: v6e:2x2x1
jax: 0.10.0
libtpu: 0.0.40
codegen_flags: <defaults>
</compile_context>

<pallas_src>
import functools

import jax
import jax.numpy as jnp
from jax.experimental import pallas as pl
from jax.experimental.pallas import tpu as pltpu


# ----------------------------------------------------------------------------- kernel

def _ln(x, g, b, eps=1e-5):
    mu = jnp.mean(x, axis=-1, keepdims=True)
    var = jnp.mean((x - mu) ** 2, axis=-1, keepdims=True)
    return (x - mu) * jax.lax.rsqrt(var + eps) * g + b


def gat_block_kernel(x_ref, hop_ref, adj_ref, sp_ref,
                     g1_ref, be1_ref,
                     wqkv_ref, wproj_ref, bproj_ref,
                     wg_ref, bg_ref, wxf_ref, bxf_ref,
                     g2_ref, be2_ref,
                     w1_ref, b1_ref, w2_ref, b2_ref,
                     o_ref, *, num_heads):
    x = x_ref[0].astype(jnp.float32)                     # (N, D)
    N, D = x.shape
    hd = D // num_heads
    scale = hd ** -0.5

    # ---------------- LN1 ----------------
    xn = _ln(x, g1_ref[...], be1_ref[...])

    # ---------------- attention (qkv_bias=False) ----------------
    qkv = jnp.dot(xn, wqkv_ref[...], preferred_element_type=jnp.float32)  # (N, 3D)
    wproj = wproj_ref[...]                                               # (D, D)

    a = jnp.zeros((N, D), jnp.float32)
    for h in range(num_heads):                           # static unroll, H small
        q = qkv[:, h * hd:(h + 1) * hd]
        k = qkv[:, D + h * hd:D + (h + 1) * hd]
        v = qkv[:, 2 * D + h * hd:2 * D + (h + 1) * hd]
        s = jax.lax.dot_general(q, k, (((1,), (1,)), ((), ())),
                                preferred_element_type=jnp.float32)       # (N, N)
        s = s * scale + hop_ref[0, h].astype(jnp.float32)
        s = s - jnp.max(s, axis=-1, keepdims=True)
        p = jnp.exp(s)
        p = p * pl.reciprocal(jnp.sum(p, axis=-1, keepdims=True), approx=True)
        oh = jnp.dot(p, v, preferred_element_type=jnp.float32)            # (N, hd)
        # fuse output projection per head: no head-concat / transpose needed
        a = a + jnp.dot(oh, wproj[h * hd:(h + 1) * hd, :],
                        preferred_element_type=jnp.float32)
    a = a + bproj_ref[...]

    # ---------------- GCN: (A @ xn) @ Wg + bg ----------------
    # TODO(synk): MGCN exact multi-order form unknown; single normalized-adjacency conv used.
    g = jnp.dot(jnp.dot(adj_ref[...], xn, preferred_element_type=jnp.float32),
                wg_ref[...], preferred_element_type=jnp.float32) + bg_ref[...]

    x1 = a + g

    # ---------------- X_Feat: (S @ x1) @ Wxf + bxf ----------------
    # TODO(synk): X_Feat exact form unknown; spatial-pos row-softmax aggregation + linear used.
    xf = jnp.dot(jnp.dot(sp_ref[...], x1, preferred_element_type=jnp.float32),
                 wxf_ref[...], preferred_element_type=jnp.float32) + bxf_ref[...]

    x2 = x + xf                                          # residual 1

    # ---------------- LN2 + MLP ----------------
    xn2 = _ln(x2, g2_ref[...], be2_ref[...])
    hdn = jnp.dot(xn2, w1_ref[...], preferred_element_type=jnp.float32) + b1_ref[...]
    # TODO(synk): PyTorch nn.GELU default is exact erf; tanh approximation used (<1e-3 diff).
    hdn = jax.nn.gelu(hdn, approximate=True)
    m = jnp.dot(hdn, w2_ref[...], preferred_element_type=jnp.float32) + b2_ref[...]

    o_ref[0] = (x2 + m).astype(o_ref.dtype)              # residual 2, single store


# ----------------------------------------------------------------------------- wrapper

def gat_block_forward(x, hop_path_encoding, p, adj_norm, sp_norm, num_heads):
    B, N, D = x.shape
    H = num_heads
    Hd = p["w1"].shape[1]
    c2 = lambda b: (0, 0)  # constant index_map -> weight stays resident in VMEM

    out = pl.pallas_call(
        functools.partial(gat_block_kernel, num_heads=num_heads),
        out_shape=jax.ShapeDtypeStruct((B, N, D), x.dtype),
        grid=(B,),
        in_specs=[
            pl.BlockSpec((1, N, D), lambda b: (b, 0, 0)),          # x
            pl.BlockSpec((1, H, N, N), lambda b: (b, 0, 0, 0)),    # hop bias
            pl.BlockSpec((N, N), c2),                              # adj_norm
            pl.BlockSpec((N, N), c2),                              # sp_norm
            pl.BlockSpec((1, D), c2),                              # g1
            pl.BlockSpec((1, D), c2),                              # be1
            pl.BlockSpec((D, 3 * D), c2),                          # w_qkv
            pl.BlockSpec((D, D), c2),                              # w_proj
            pl.BlockSpec((1, D), c2),                              # b_proj
            pl.BlockSpec((D, D), c2),                              # wg
            pl.BlockSpec((1, D), c2),                              # bg
            pl.BlockSpec((D, D), c2),                              # wxf
            pl.BlockSpec((1, D), c2),                              # bxf
            pl.BlockSpec((1, D), c2),                              # g2
            pl.BlockSpec((1, D), c2),                              # be2
            pl.BlockSpec((D, Hd), c2),                             # w1
            pl.BlockSpec((1, Hd), c2),                             # b1
            pl.BlockSpec((Hd, D), c2),                             # w2
            pl.BlockSpec((1, D), c2),                              # b2
        ],
        out_specs=pl.BlockSpec((1, N, D), lambda b: (b, 0, 0)),
        compiler_params=pltpu.CompilerParams(
            dimension_semantics=("parallel",)),                    # v7x: 2 TCs share batch
    )(x, hop_path_encoding, adj_norm, sp_norm,
      p["g1"], p["be1"], p["w_qkv"], p["w_proj"], p["b_proj"],
      p["wg"], p["bg"], p["wxf"], p["bxf"],
      p["g2"], p["be2"], p["w1"], p["b1"], p["w2"], p["b2"])

    return out, hop_path_encoding


# ----------------------------------------------------------------------------- pure-JAX reference

def ref_forward(x, hop, p, adj, sp, H):
    B, N, D = x.shape
    hd = D // H

    def ln(v, g, b):
        mu = v.mean(-1, keepdims=True)
        var = ((v - mu) ** 2).mean(-1, keepdims=True)
        return (v - mu) / jnp.sqrt(var + 1e-5) * g + b

    xn = ln(x, p["g1"], p["be1"])
    qkv = (xn @ p["w_qkv"]).reshape(B, N, 3, H, hd).transpose(2, 0, 3, 1, 4)
    q, k, v = qkv[0], qkv[1], qkv[2]
    s = jnp.einsum("bhqd,bhkd->bhqk", q, k) * (hd ** -0.5) + hop
    pa = jax.nn.softmax(s, axis=-1)
    a = jnp.einsum("bhqk,bhkd->bhqd", pa, v).transpose(0, 2, 1, 3).reshape(B, N, D)
    a = a @ p["w_proj"] + p["b_proj"]
    g = jnp.einsum("ij,bjd->bid", adj, xn) @ p["wg"] + p["bg"]
    x1 = a + g
    xf = jnp.einsum("ij,bjd->bid", sp, x1) @ p["wxf"] + p["bxf"]
    x2 = x + xf
    xn2 = ln(x2, p["g2"], p["be2"])
    h = jax.nn.gelu(xn2 @ p["w1"] + p["b1"], approximate=True)
    return x2 + (h @ p["w2"] + p["b2"])


# ----------------------------------------------------------------------------- main

if __name__ == "__main__":
    B, N, D, H = 2, 16, 32, 4          # batch, joints(in_channel), dim, num_heads
    mlp_hidden = int(D * 4.0)

    key = jax.random.PRNGKey(0)
    ks = jax.random.split(key, 16)

    def init(k, shape, scale=0.02):
        return scale * jax.random.normal(k, shape, jnp.float32)

    x = jax.random.normal(ks[0], (B, N, D), jnp.float32)
    hop_path_encoding = 0.1 * jax.random.normal(ks[1], (B, H, N, N), jnp.float32)

    # graph_adj: chain graph with self-loops, symmetric degree normalization
    A = jnp.eye(N) + jnp.eye(N, k=1) + jnp.eye(N, k=-1)
    dinv = 1.0 / jnp.sqrt(A.sum(-1))
    adj_norm = (A * dinv[:, None] * dinv[None, :]).astype(jnp.float32)

    # spatial_pos: hop distance |i-j| -> row-softmax aggregation weights
    idx = jnp.arange(N)
    sp = jnp.abs(idx[:, None] - idx[None, :]).astype(jnp.float32)
    sp_norm = jax.nn.softmax(-sp, axis=-1).astype(jnp.float32)

    params = {
        "g1": jnp.ones((1, D), jnp.float32), "be1": jnp.zeros((1, D), jnp.float32),
        "g2": jnp.ones((1, D), jnp.float32), "be2": jnp.zeros((1, D), jnp.float32),
        "w_qkv": init(ks[2], (D, 3 * D)),
        "w_proj": init(ks[3], (D, D)),    "b_proj": jnp.zeros((1, D), jnp.float32),
        "wg": init(ks[4], (D, D)),        "bg": jnp.zeros((1, D), jnp.float32),
        "wxf": init(ks[5], (D, D)),       "bxf": jnp.zeros((1, D), jnp.float32),
        "w1": init(ks[6], (D, mlp_hidden)), "b1": jnp.zeros((1, mlp_hidden), jnp.float32),
        "w2": init(ks[7], (mlp_hidden, D)), "b2": jnp.zeros((1, D), jnp.float32),
    }

    fwd = jax.jit(functools.partial(gat_block_forward, num_heads=H))
    out_x, out_hop = fwd(x, hop_path_encoding, params, adj_norm, sp_norm)
    jax.block_until_ready(out_x)

    assert out_x.shape == (B, N, D) and out_hop.shape == (B, H, N, N)
    assert bool(jnp.all(jnp.isfinite(out_x)))

    ref = ref_forward(x, hop_path_encoding, params, adj_norm, sp_norm, H)
    err = float(jnp.max(jnp.abs(out_x - ref)))
    assert err < 2e-2, f"mismatch vs reference: {err}"

    print("KERNEL_OK")
</pallas_src>

<mosaic_0001>
module attributes {stable_mosaic.version = 11 : i64} {
  func.func @gat_block_kernel(%arg0: i32, %arg1: memref<1x16x32xf32, #tpu.memory_space<vmem>>, %arg2: memref<1x4x16x16xf32, #tpu.memory_space<vmem>>, %arg3: memref<16x16xf32, #tpu.memory_space<vmem>>, %arg4: memref<16x16xf32, #tpu.memory_space<vmem>>, %arg5: memref<1x32xf32, #tpu.memory_space<vmem>>, %arg6: memref<1x32xf32, #tpu.memory_space<vmem>>, %arg7: memref<32x96xf32, #tpu.memory_space<vmem>>, %arg8: memref<32x32xf32, #tpu.memory_space<vmem>>, %arg9: memref<1x32xf32, #tpu.memory_space<vmem>>, %arg10: memref<32x32xf32, #tpu.memory_space<vmem>>, %arg11: memref<1x32xf32, #tpu.memory_space<vmem>>, %arg12: memref<32x32xf32, #tpu.memory_space<vmem>>, %arg13: memref<1x32xf32, #tpu.memory_space<vmem>>, %arg14: memref<1x32xf32, #tpu.memory_space<vmem>>, %arg15: memref<1x32xf32, #tpu.memory_space<vmem>>, %arg16: memref<32x128xf32, #tpu.memory_space<vmem>>, %arg17: memref<1x128xf32, #tpu.memory_space<vmem>>, %arg18: memref<128x32xf32, #tpu.memory_space<vmem>>, %arg19: memref<1x32xf32, #tpu.memory_space<vmem>>, %arg20: memref<1x16x32xf32, #tpu.memory_space<vmem>>) attributes {dimension_semantics = [#tpu.dimension_semantics<parallel>], iteration_bounds = array<i64: 2>, scalar_prefetch = 0 : i64, scratch_operands = 0 : i64, tpu.core_type = #tpu.core_type<tc>, window_params = [{transform_indices = @transform_0, window_bounds = array<i64: 1, 16, 32>}, {transform_indices = @transform_1, window_bounds = array<i64: 1, 4, 16, 16>}, {pipeline_mode = #tpu.pipeline_mode<synchronous>, transform_indices = @transform_2, window_bounds = array<i64: 16, 16>}, {pipeline_mode = #tpu.pipeline_mode<synchronous>, transform_indices = @transform_3, window_bounds = array<i64: 16, 16>}, {pipeline_mode = #tpu.pipeline_mode<synchronous>, transform_indices = @transform_4, window_bounds = array<i64: 1, 32>}, {pipeline_mode = #tpu.pipeline_mode<synchronous>, transform_indices = @transform_5, window_bounds = array<i64: 1, 32>}, {pipeline_mode = #tpu.pipeline_mode<synchronous>, transform_indices = @transform_6, window_bounds = array<i64: 32, 96>}, {pipeline_mode = #tpu.pipeline_mode<synchronous>, transform_indices = @transform_7, window_bounds = array<i64: 32, 32>}, {pipeline_mode = #tpu.pipeline_mode<synchronous>, transform_indices = @transform_8, window_bounds = array<i64: 1, 32>}, {pipeline_mode = #tpu.pipeline_mode<synchronous>, transform_indices = @transform_9, window_bounds = array<i64: 32, 32>}, {pipeline_mode = #tpu.pipeline_mode<synchronous>, transform_indices = @transform_10, window_bounds = array<i64: 1, 32>}, {pipeline_mode = #tpu.pipeline_mode<synchronous>, transform_indices = @transform_11, window_bounds = array<i64: 32, 32>}, {pipeline_mode = #tpu.pipeline_mode<synchronous>, transform_indices = @transform_12, window_bounds = array<i64: 1, 32>}, {pipeline_mode = #tpu.pipeline_mode<synchronous>, transform_indices = @transform_13, window_bounds = array<i64: 1, 32>}, {pipeline_mode = #tpu.pipeline_mode<synchronous>, transform_indices = @transform_14, window_bounds = array<i64: 1, 32>}, {pipeline_mode = #tpu.pipeline_mode<synchronous>, transform_indices = @transform_15, window_bounds = array<i64: 32, 128>}, {pipeline_mode = #tpu.pipeline_mode<synchronous>, transform_indices = @transform_16, window_bounds = array<i64: 1, 128>}, {pipeline_mode = #tpu.pipeline_mode<synchronous>, transform_indices = @transform_17, window_bounds = array<i64: 128, 32>}, {pipeline_mode = #tpu.pipeline_mode<synchronous>, transform_indices = @transform_18, window_bounds = array<i64: 1, 32>}, {transform_indices = @transform_19, window_bounds = array<i64: 1, 16, 32>}]} {
    %c0 = arith.constant 0 : index
    %c0_0 = arith.constant 0 : index
    %c0_1 = arith.constant 0 : index
    %0 = vector.load %arg1[%c0, %c0_0, %c0_1] : memref<1x16x32xf32, #tpu.memory_space<vmem>>, vector<1x16x32xf32>
    %1 = vector.shape_cast %0 : vector<1x16x32xf32> to vector<16x32xf32>
    %c0_2 = arith.constant 0 : index
    %c0_3 = arith.constant 0 : index
    %2 = vector.load %arg5[%c0_2, %c0_3] : memref<1x32xf32, #tpu.memory_space<vmem>>, vector<1x32xf32>
    %c0_4 = arith.constant 0 : index
    %c0_5 = arith.constant 0 : index
    %3 = vector.load %arg6[%c0_4, %c0_5] : memref<1x32xf32, #tpu.memory_space<vmem>>, vector<1x32xf32>
    %cst = arith.constant dense<0.000000e+00> : vector<16xf32>
    %4 = vector.multi_reduction <add>, %1, %cst [1] : vector<16x32xf32> to vector<16xf32>
    %5 = vector.shape_cast %4 : vector<16xf32> to vector<16x1xf32>
    %cst_6 = arith.constant 3.200000e+01 : f32
    %6 = vector.broadcast %cst_6 : f32 to vector<16x1xf32>
    %7 = arith.divf %5, %6 : vector<16x1xf32>
    %8 = vector.broadcast %7 : vector<16x1xf32> to vector<16x32xf32>
    %9 = arith.subf %1, %8 : vector<16x32xf32>
    %10 = arith.mulf %9, %9 : vector<16x32xf32>
    %cst_7 = arith.constant dense<0.000000e+00> : vector<16xf32>
    %11 = vector.multi_reduction <add>, %10, %cst_7 [1] : vector<16x32xf32> to vector<16xf32>
    %12 = vector.shape_cast %11 : vector<16xf32> to vector<16x1xf32>
    %cst_8 = arith.constant 3.200000e+01 : f32
    %13 = vector.broadcast %cst_8 : f32 to vector<16x1xf32>
    %14 = arith.divf %12, %13 : vector<16x1xf32>
    %15 = vector.broadcast %7 : vector<16x1xf32> to vector<16x32xf32>
    %16 = arith.subf %1, %15 : vector<16x32xf32>
    %cst_9 = arith.constant 9.99999974E-6 : f32
    %17 = vector.broadcast %cst_9 : f32 to vector<16x1xf32>
    %18 = arith.addf %14, %17 : vector<16x1xf32>
    %19 = math.rsqrt %18 : vector<16x1xf32>
    %20 = vector.broadcast %19 : vector<16x1xf32> to vector<16x32xf32>
    %21 = arith.mulf %16, %20 : vector<16x32xf32>
    %22 = vector.broadcast %2 : vector<1x32xf32> to vector<16x32xf32>
    %23 = arith.mulf %21, %22 : vector<16x32xf32>
    %24 = vector.broadcast %3 : vector<1x32xf32> to vector<16x32xf32>
    %25 = arith.addf %23, %24 : vector<16x32xf32>
    %c0_10 = arith.constant 0 : index
    %c0_11 = arith.constant 0 : index
    %26 = vector.load %arg7[%c0_10, %c0_11] : memref<32x96xf32, #tpu.memory_space<vmem>>, vector<32x96xf32>
    %cst_12 = arith.constant dense<0.000000e+00> : vector<16x96xf32>
    %27 = tpu.matmul %25, %26, %cst_12 {dimension_numbers = #tpu.dot_dimension_numbers<[1], [0], [0], [1], [0, 0, 1, 1], [], []>} : vector<16x32xf32>, vector<32x96xf32>, vector<16x96xf32> -> vector<16x96xf32>
    %c0_13 = arith.constant 0 : index
    %c0_14 = arith.constant 0 : index
    %28 = vector.load %arg8[%c0_13, %c0_14] : memref<32x32xf32, #tpu.memory_space<vmem>>, vector<32x32xf32>
    %cst_15 = arith.constant 0.000000e+00 : f32
    %29 = vector.broadcast %cst_15 : f32 to vector<16x32xf32>
    %30 = vector.extract_strided_slice %27 {offsets = [0, 0], sizes = [16, 8], strides = [1, 1]} : vector<16x96xf32> to vector<16x8xf32>
    %31 = vector.extract_strided_slice %27 {offsets = [0, 32], sizes = [16, 8], strides = [1, 1]} : vector<16x96xf32> to vector<16x8xf32>
    %32 = vector.extract_strided_slice %27 {offsets = [0, 64], sizes = [16, 8], strides = [1, 1]} : vector<16x96xf32> to vector<16x8xf32>
    %cst_16 = arith.constant dense<0.000000e+00> : vector<16x16xf32>
    %33 = tpu.matmul %30, %31, %cst_16 {dimension_numbers = #tpu.dot_dimension_numbers<[1], [1], [0], [0], [0, 0, 1, 0], [], []>} : vector<16x8xf32>, vector<16x8xf32>, vector<16x16xf32> -> vector<16x16xf32>
    %cst_17 = arith.constant 0.353553385 : f32
    %34 = vector.broadcast %cst_17 : f32 to vector<16x16xf32>
    %35 = arith.mulf %33, %34 : vector<16x16xf32>
    %c0_18 = arith.constant 0 : index
    %c0_19 = arith.constant 0 : index
    %c0_20 = arith.constant 0 : index
    %c0_21 = arith.constant 0 : index
    %36 = vector.load %arg2[%c0_18, %c0_19, %c0_20, %c0_21] : memref<1x4x16x16xf32, #tpu.memory_space<vmem>>, vector<1x1x16x16xf32>
    %37 = vector.shape_cast %36 : vector<1x1x16x16xf32> to vector<16x16xf32>
    %38 = arith.addf %35, %37 : vector<16x16xf32>
    %cst_22 = arith.constant dense<0xFF800000> : vector<16xf32>
    %39 = vector.multi_reduction <maximumf>, %38, %cst_22 [1] : vector<16x16xf32> to vector<16xf32>
    %40 = vector.shape_cast %39 : vector<16xf32> to vector<16x1xf32>
    %41 = vector.broadcast %40 : vector<16x1xf32> to vector<16x16xf32>
    %42 = arith.subf %38, %41 : vector<16x16xf32>
    %43 = math.exp %42 : vector<16x16xf32>
    %cst_23 = arith.constant dense<0.000000e+00> : vector<16xf32>
    %44 = vector.multi_reduction <add>, %43, %cst_23 [1] : vector<16x16xf32> to vector<16xf32>
    %45 = vector.shape_cast %44 : vector<16xf32> to vector<16x1xf32>
    %46 = tpu.reciprocal %45 {approx = true} : vector<16x1xf32> -> vector<16x1xf32>
    %47 = vector.broadcast %46 : vector<16x1xf32> to vector<16x16xf32>
    %48 = arith.mulf %43, %47 : vector<16x16xf32>
    %cst_24 = arith.constant dense<0.000000e+00> : vector<16x8xf32>
    %49 = tpu.matmul %48, %32, %cst_24 {dimension_numbers = #tpu.dot_dimension_numbers<[1], [0], [0], [1], [0, 0, 1, 1], [], []>} : vector<16x16xf32>, vector<16x8xf32>, vector<16x8xf32> -> vector<16x8xf32>
    %50 = vector.extract_strided_slice %28 {offsets = [0, 0], sizes = [8, 32], strides = [1, 1]} : vector<32x32xf32> to vector<8x32xf32>
    %cst_25 = arith.constant dense<0.000000e+00> : vector<16x32xf32>
    %51 = tpu.matmul %49, %50, %cst_25 {dimension_numbers = #tpu.dot_dimension_numbers<[1], [0], [0], [1], [0, 0, 1, 1], [], []>} : vector<16x8xf32>, vector<8x32xf32>, vector<16x32xf32> -> vector<16x32xf32>
    %52 = arith.addf %29, %51 : vector<16x32xf32>
    %53 = vector.extract_strided_slice %27 {offsets = [0, 8], sizes = [16, 8], strides = [1, 1]} : vector<16x96xf32> to vector<16x8xf32>
    %54 = vector.extract_strided_slice %27 {offsets = [0, 40], sizes = [16, 8], strides = [1, 1]} : vector<16x96xf32> to vector<16x8xf32>
    %55 = vector.extract_strided_slice %27 {offsets = [0, 72], sizes = [16, 8], strides = [1, 1]} : vector<16x96xf32> to vector<16x8xf32>
    %cst_26 = arith.constant dense<0.000000e+00> : vector<16x16xf32>
    %56 = tpu.matmul %53, %54, %cst_26 {dimension_numbers = #tpu.dot_dimension_numbers<[1], [1], [0], [0], [0, 0, 1, 0], [], []>} : vector<16x8xf32>, vector<16x8xf32>, vector<16x16xf32> -> vector<16x16xf32>
    %cst_27 = arith.constant 0.353553385 : f32
    %57 = vector.broadcast %cst_27 : f32 to vector<16x16xf32>
    %58 = arith.mulf %56, %57 : vector<16x16xf32>
    %c0_28 = arith.constant 0 : index
    %c1 = arith.constant 1 : index
    %c0_29 = arith.constant 0 : index
    %c0_30 = arith.constant 0 : index
    %59 = vector.load %arg2[%c0_28, %c1, %c0_29, %c0_30] : memref<1x4x16x16xf32, #tpu.memory_space<vmem>>, vector<1x1x16x16xf32>
    %60 = vector.shape_cast %59 : vector<1x1x16x16xf32> to vector<16x16xf32>
    %61 = arith.addf %58, %60 : vector<16x16xf32>
    %cst_31 = arith.constant dense<0xFF800000> : vector<16xf32>
    %62 = vector.multi_reduction <maximumf>, %61, %cst_31 [1] : vector<16x16xf32> to vector<16xf32>
    %63 = vector.shape_cast %62 : vector<16xf32> to vector<16x1xf32>
    %64 = vector.broadcast %63 : vector<16x1xf32> to vector<16x16xf32>
    %65 = arith.subf %61, %64 : vector<16x16xf32>
    %66 = math.exp %65 : vector<16x16xf32>
    %cst_32 = arith.constant dense<0.000000e+00> : vector<16xf32>
    %67 = vector.multi_reduction <add>, %66, %cst_32 [1] : vector<16x16xf32> to vector<16xf32>
    %68 = vector.shape_cast %67 : vector<16xf32> to vector<16x1xf32>
    %69 = tpu.reciprocal %68 {approx = true} : vector<16x1xf32> -> vector<16x1xf32>
    %70 = vector.broadcast %69 : vector<16x1xf32> to vector<16x16xf32>
    %71 = arith.mulf %66, %70 : vector<16x16xf32>
    %cst_33 = arith.constant dense<0.000000e+00> : vector<16x8xf32>
    %72 = tpu.matmul %71, %55, %cst_33 {dimension_numbers = #tpu.dot_dimension_numbers<[1], [0], [0], [1], [0, 0, 1, 1], [], []>} : vector<16x16xf32>, vector<16x8xf32>, vector<16x8xf32> -> vector<16x8xf32>
    %73 = vector.extract_strided_slice %28 {offsets = [8, 0], sizes = [8, 32], strides = [1, 1]} : vector<32x32xf32> to vector<8x32xf32>
    %cst_34 = arith.constant dense<0.000000e+00> : vector<16x32xf32>
    %74 = tpu.matmul %72, %73, %cst_34 {dimension_numbers = #tpu.dot_dimension_numbers<[1], [0], [0], [1], [0, 0, 1, 1], [], []>} : vector<16x8xf32>, vector<8x32xf32>, vector<16x32xf32> -> vector<16x32xf32>
    %75 = arith.addf %52, %74 : vector<16x32xf32>
    %76 = vector.extract_strided_slice %27 {offsets = [0, 16], sizes = [16, 8], strides = [1, 1]} : vector<16x96xf32> to vector<16x8xf32>
    %77 = vector.extract_strided_slice %27 {offsets = [0, 48], sizes = [16, 8], strides = [1, 1]} : vector<16x96xf32> to vector<16x8xf32>
    %78 = vector.extract_strided_slice %27 {offsets = [0, 80], sizes = [16, 8], strides = [1, 1]} : vector<16x96xf32> to vector<16x8xf32>
    %cst_35 = arith.constant dense<0.000000e+00> : vector<16x16xf32>
    %79 = tpu.matmul %76, %77, %cst_35 {dimension_numbers = #tpu.dot_dimension_numbers<[1], [1], [0], [0], [0, 0, 1, 0], [], []>} : vector<16x8xf32>, vector<16x8xf32>, vector<16x16xf32> -> vector<16x16xf32>
    %cst_36 = arith.constant 0.353553385 : f32
    %80 = vector.broadcast %cst_36 : f32 to vector<16x16xf32>
    %81 = arith.mulf %79, %80 : vector<16x16xf32>
    %c0_37 = arith.constant 0 : index
    %c2 = arith.constant 2 : index
    %c0_38 = arith.constant 0 : index
    %c0_39 = arith.constant 0 : index
    %82 = vector.load %arg2[%c0_37, %c2, %c0_38, %c0_39] : memref<1x4x16x16xf32, #tpu.memory_space<vmem>>, vector<1x1x16x16xf32>
    %83 = vector.shape_cast %82 : vector<1x1x16x16xf32> to vector<16x16xf32>
    %84 = arith.addf %81, %83 : vector<16x16xf32>
    %cst_40 = arith.constant dense<0xFF800000> : vector<16xf32>
    %85 = vector.multi_reduction <maximumf>, %84, %cst_40 [1] : vector<16x16xf32> to vector<16xf32>
    %86 = vector.shape_cast %85 : vector<16xf32> to vector<16x1xf32>
    %87 = vector.broadcast %86 : vector<16x1xf32> to vector<16x16xf32>
    %88 = arith.subf %84, %87 : vector<16x16xf32>
    %89 = math.exp %88 : vector<16x16xf32>
    %cst_41 = arith.constant dense<0.000000e+00> : vector<16xf32>
    %90 = vector.multi_reduction <add>, %89, %cst_41 [1] : vector<16x16xf32> to vector<16xf32>
    %91 = vector.shape_cast %90 : vector<16xf32> to vector<16x1xf32>
    %92 = tpu.reciprocal %91 {approx = true} : vector<16x1xf32> -> vector<16x1xf32>
    %93 = vector.broadcast %92 : vector<16x1xf32> to vector<16x16xf32>
    %94 = arith.mulf %89, %93 : vector<16x16xf32>
    %cst_42 = arith.constant dense<0.000000e+00> : vector<16x8xf32>
    %95 = tpu.matmul %94, %78, %cst_42 {dimension_numbers = #tpu.dot_dimension_numbers<[1], [0], [0], [1], [0, 0, 1, 1], [], []>} : vector<16x16xf32>, vector<16x8xf32>, vector<16x8xf32> -> vector<16x8xf32>
    %96 = vector.extract_strided_slice %28 {offsets = [16, 0], sizes = [8, 32], strides = [1, 1]} : vector<32x32xf32> to vector<8x32xf32>
    %cst_43 = arith.constant dense<0.000000e+00> : vector<16x32xf32>
    %97 = tpu.matmul %95, %96, %cst_43 {dimension_numbers = #tpu.dot_dimension_numbers<[1], [0], [0], [1], [0, 0, 1, 1], [], []>} : vector<16x8xf32>, vector<8x32xf32>, vector<16x32xf32> -> vector<16x32xf32>
    %98 = arith.addf %75, %97 : vector<16x32xf32>
    %99 = vector.extract_strided_slice %27 {offsets = [0, 24], sizes = [16, 8], strides = [1, 1]} : vector<16x96xf32> to vector<16x8xf32>
    %100 = vector.extract_strided_slice %27 {offsets = [0, 56], sizes = [16, 8], strides = [1, 1]} : vector<16x96xf32> to vector<16x8xf32>
    %101 = vector.extract_strided_slice %27 {offsets = [0, 88], sizes = [16, 8], strides = [1, 1]} : vector<16x96xf32> to vector<16x8xf32>
    %cst_44 = arith.constant dense<0.000000e+00> : vector<16x16xf32>
    %102 = tpu.matmul %99, %100, %cst_44 {dimension_numbers = #tpu.dot_dimension_numbers<[1], [1], [0], [0], [0, 0, 1, 0], [], []>} : vector<16x8xf32>, vector<16x8xf32>, vector<16x16xf32> -> vector<16x16xf32>
    %cst_45 = arith.constant 0.353553385 : f32
    %103 = vector.broadcast %cst_45 : f32 to vector<16x16xf32>
    %104 = arith.mulf %102, %103 : vector<16x16xf32>
    %c0_46 = arith.constant 0 : index
    %c3 = arith.constant 3 : index
    %c0_47 = arith.constant 0 : index
    %c0_48 = arith.constant 0 : index
    %105 = vector.load %arg2[%c0_46, %c3, %c0_47, %c0_48] : memref<1x4x16x16xf32, #tpu.memory_space<vmem>>, vector<1x1x16x16xf32>
    %106 = vector.shape_cast %105 : vector<1x1x16x16xf32> to vector<16x16xf32>
    %107 = arith.addf %104, %106 : vector<16x16xf32>
    %cst_49 = arith.constant dense<0xFF800000> : vector<16xf32>
    %108 = vector.multi_reduction <maximumf>, %107, %cst_49 [1] : vector<16x16xf32> to vector<16xf32>
    %109 = vector.shape_cast %108 : vector<16xf32> to vector<16x1xf32>
    %110 = vector.broadcast %109 : vector<16x1xf32> to vector<16x16xf32>
    %111 = arith.subf %107, %110 : vector<16x16xf32>
    %112 = math.exp %111 : vector<16x16xf32>
    %cst_50 = arith.constant dense<0.000000e+00> : vector<16xf32>
    %113 = vector.multi_reduction <add>, %112, %cst_50 [1] : vector<16x16xf32> to vector<16xf32>
    %114 = vector.shape_cast %113 : vector<16xf32> to vector<16x1xf32>
    %115 = tpu.reciprocal %114 {approx = true} : vector<16x1xf32> -> vector<16x1xf32>
    %116 = vector.broadcast %115 : vector<16x1xf32> to vector<16x16xf32>
    %117 = arith.mulf %112, %116 : vector<16x16xf32>
    %cst_51 = arith.constant dense<0.000000e+00> : vector<16x8xf32>
    %118 = tpu.matmul %117, %101, %cst_51 {dimension_numbers = #tpu.dot_dimension_numbers<[1], [0], [0], [1], [0, 0, 1, 1], [], []>} : vector<16x16xf32>, vector<16x8xf32>, vector<16x8xf32> -> vector<16x8xf32>
    %119 = vector.extract_strided_slice %28 {offsets = [24, 0], sizes = [8, 32], strides = [1, 1]} : vector<32x32xf32> to vector<8x32xf32>
    %cst_52 = arith.constant dense<0.000000e+00> : vector<16x32xf32>
    %120 = tpu.matmul %118, %119, %cst_52 {dimension_numbers = #tpu.dot_dimension_numbers<[1], [0], [0], [1], [0, 0, 1, 1], [], []>} : vector<16x8xf32>, vector<8x32xf32>, vector<16x32xf32> -> vector<16x32xf32>
    %121 = arith.addf %98, %120 : vector<16x32xf32>
    %c0_53 = arith.constant 0 : index
    %c0_54 = arith.constant 0 : index
    %122 = vector.load %arg9[%c0_53, %c0_54] : memref<1x32xf32, #tpu.memory_space<vmem>>, vector<1x32xf32>
    %123 = vector.broadcast %122 : vector<1x32xf32> to vector<16x32xf32>
    %124 = arith.addf %121, %123 : vector<16x32xf32>
    %c0_55 = arith.constant 0 : index
    %c0_56 = arith.constant 0 : index
    %125 = vector.load %arg3[%c0_55, %c0_56] : memref<16x16xf32, #tpu.memory_space<vmem>>, vector<16x16xf32>
    %cst_57 = arith.constant dense<0.000000e+00> : vector<16x32xf32>
    %126 = tpu.matmul %125, %25, %cst_57 {dimension_numbers = #tpu.dot_dimension_numbers<[1], [0], [0], [1], [0, 0, 1, 1], [], []>} : vector<16x16xf32>, vector<16x32xf32>, vector<16x32xf32> -> vector<16x32xf32>
    %c0_58 = arith.constant 0 : index
    %c0_59 = arith.constant 0 : index
    %127 = vector.load %arg10[%c0_58, %c0_59] : memref<32x32xf32, #tpu.memory_space<vmem>>, vector<32x32xf32>
    %cst_60 = arith.constant dense<0.000000e+00> : vector<16x32xf32>
    %128 = tpu.matmul %126, %127, %cst_60 {dimension_numbers = #tpu.dot_dimension_numbers<[1], [0], [0], [1], [0, 0, 1, 1], [], []>} : vector<16x32xf32>, vector<32x32xf32>, vector<16x32xf32> -> vector<16x32xf32>
    %c0_61 = arith.constant 0 : index
    %c0_62 = arith.constant 0 : index
    %129 = vector.load %arg11[%c0_61, %c0_62] : memref<1x32xf32, #tpu.memory_space<vmem>>, vector<1x32xf32>
    %130 = vector.broadcast %129 : vector<1x32xf32> to vector<16x32xf32>
    %131 = arith.addf %128, %130 : vector<16x32xf32>
    %132 = arith.addf %124, %131 : vector<16x32xf32>
    %c0_63 = arith.constant 0 : index
    %c0_64 = arith.constant 0 : index
    %133 = vector.load %arg4[%c0_63, %c0_64] : memref<16x16xf32, #tpu.memory_space<vmem>>, vector<16x16xf32>
    %cst_65 = arith.constant dense<0.000000e+00> : vector<16x32xf32>
    %134 = tpu.matmul %133, %132, %cst_65 {dimension_numbers = #tpu.dot_dimension_numbers<[1], [0], [0], [1], [0, 0, 1, 1], [], []>} : vector<16x16xf32>, vector<16x32xf32>, vector<16x32xf32> -> vector<16x32xf32>
    %c0_66 = arith.constant 0 : index
    %c0_67 = arith.constant 0 : index
    %135 = vector.load %arg12[%c0_66, %c0_67] : memref<32x32xf32, #tpu.memory_space<vmem>>, vector<32x32xf32>
    %cst_68 = arith.constant dense<0.000000e+00> : vector<16x32xf32>
    %136 = tpu.matmul %134, %135, %cst_68 {dimension_numbers = #tpu.dot_dimension_numbers<[1], [0], [0], [1], [0, 0, 1, 1], [], []>} : vector<16x32xf32>, vector<32x32xf32>, vector<16x32xf32> -> vector<16x32xf32>
    %c0_69 = arith.constant 0 : index
    %c0_70 = arith.constant 0 : index
    %137 = vector.load %arg13[%c0_69, %c0_70] : memref<1x32xf32, #tpu.memory_space<vmem>>, vector<1x32xf32>
    %138 = vector.broadcast %137 : vector<1x32xf32> to vector<16x32xf32>
    %139 = arith.addf %136, %138 : vector<16x32xf32>
    %140 = arith.addf %1, %139 : vector<16x32xf32>
    %c0_71 = arith.constant 0 : index
    %c0_72 = arith.constant 0 : index
    %141 = vector.load %arg14[%c0_71, %c0_72] : memref<1x32xf32, #tpu.memory_space<vmem>>, vector<1x32xf32>
    %c0_73 = arith.constant 0 : index
    %c0_74 = arith.constant 0 : index
    %142 = vector.load %arg15[%c0_73, %c0_74] : memref<1x32xf32, #tpu.memory_space<vmem>>, vector<1x32xf32>
    %cst_75 = arith.constant dense<0.000000e+00> : vector<16xf32>
    %143 = vector.multi_reduction <add>, %140, %cst_75 [1] : vector<16x32xf32> to vector<16xf32>
    %144 = vector.shape_cast %143 : vector<16xf32> to vector<16x1xf32>
    %cst_76 = arith.constant 3.200000e+01 : f32
    %145 = vector.broadcast %cst_76 : f32 to vector<16x1xf32>
    %146 = arith.divf %144, %145 : vector<16x1xf32>
    %147 = vector.broadcast %146 : vector<16x1xf32> to vector<16x32xf32>
    %148 = arith.subf %140, %147 : vector<16x32xf32>
    %149 = arith.mulf %148, %148 : vector<16x32xf32>
    %cst_77 = arith.constant dense<0.000000e+00> : vector<16xf32>
    %150 = vector.multi_reduction <add>, %149, %cst_77 [1] : vector<16x32xf32> to vector<16xf32>
    %151 = vector.shape_cast %150 : vector<16xf32> to vector<16x1xf32>
    %cst_78 = arith.constant 3.200000e+01 : f32
    %152 = vector.broadcast %cst_78 : f32 to vector<16x1xf32>
    %153 = arith.divf %151, %152 : vector<16x1xf32>
    %154 = vector.broadcast %146 : vector<16x1xf32> to vector<16x32xf32>
    %155 = arith.subf %140, %154 : vector<16x32xf32>
    %cst_79 = arith.constant 9.99999974E-6 : f32
    %156 = vector.broadcast %cst_79 : f32 to vector<16x1xf32>
    %157 = arith.addf %153, %156 : vector<16x1xf32>
    %158 = math.rsqrt %157 : vector<16x1xf32>
    %159 = vector.broadcast %158 : vector<16x1xf32> to vector<16x32xf32>
    %160 = arith.mulf %155, %159 : vector<16x32xf32>
    %161 = vector.broadcast %141 : vector<1x32xf32> to vector<16x32xf32>
    %162 = arith.mulf %160, %161 : vector<16x32xf32>
    %163 = vector.broadcast %142 : vector<1x32xf32> to vector<16x32xf32>
    %164 = arith.addf %162, %163 : vector<16x32xf32>
    %c0_80 = arith.constant 0 : index
    %c0_81 = arith.constant 0 : index
    %165 = vector.load %arg16[%c0_80, %c0_81] : memref<32x128xf32, #tpu.memory_space<vmem>>, vector<32x128xf32>
    %cst_82 = arith.constant dense<0.000000e+00> : vector<16x128xf32>
    %166 = tpu.matmul %164, %165, %cst_82 {dimension_numbers = #tpu.dot_dimension_numbers<[1], [0], [0], [1], [0, 0, 1, 1], [], []>} : vector<16x32xf32>, vector<32x128xf32>, vector<16x128xf32> -> vector<16x128xf32>
    %c0_83 = arith.constant 0 : index
    %c0_84 = arith.constant 0 : index
    %167 = vector.load %arg17[%c0_83, %c0_84] : memref<1x128xf32, #tpu.memory_space<vmem>>, vector<1x128xf32>
    %168 = vector.broadcast %167 : vector<1x128xf32> to vector<16x128xf32>
    %169 = arith.addf %166, %168 : vector<16x128xf32>
    %170 = arith.mulf %169, %169 : vector<16x128xf32>
    %171 = arith.mulf %169, %170 : vector<16x128xf32>
    %cst_85 = arith.constant 4.471500e-02 : f32
    %172 = vector.broadcast %cst_85 : f32 to vector<16x128xf32>
    %173 = arith.mulf %172, %171 : vector<16x128xf32>
    %174 = arith.addf %169, %173 : vector<16x128xf32>
    %cst_86 = arith.constant 0.797884583 : f32
    %175 = vector.broadcast %cst_86 : f32 to vector<16x128xf32>
    %176 = arith.mulf %175, %174 : vector<16x128xf32>
    %177 = math.tanh %176 : vector<16x128xf32>
    %cst_87 = arith.constant 1.000000e+00 : f32
    %178 = vector.broadcast %cst_87 : f32 to vector<16x128xf32>
    %179 = arith.addf %178, %177 : vector<16x128xf32>
    %cst_88 = arith.constant 5.000000e-01 : f32
    %180 = vector.broadcast %cst_88 : f32 to vector<16x128xf32>
    %181 = arith.mulf %180, %179 : vector<16x128xf32>
    %182 = arith.mulf %169, %181 : vector<16x128xf32>
    %c0_89 = arith.constant 0 : index
    %c0_90 = arith.constant 0 : index
    %183 = vector.load %arg18[%c0_89, %c0_90] : memref<128x32xf32, #tpu.memory_space<vmem>>, vector<128x32xf32>
    %cst_91 = arith.constant dense<0.000000e+00> : vector<16x32xf32>
    %184 = tpu.matmul %182, %183, %cst_91 {dimension_numbers = #tpu.dot_dimension_numbers<[1], [0], [0], [1], [0, 0, 1, 1], [], []>} : vector<16x128xf32>, vector<128x32xf32>, vector<16x32xf32> -> vector<16x32xf32>
    %c0_92 = arith.constant 0 : index
    %c0_93 = arith.constant 0 : index
    %185 = vector.load %arg19[%c0_92, %c0_93] : memref<1x32xf32, #tpu.memory_space<vmem>>, vector<1x32xf32>
    %186 = vector.broadcast %185 : vector<1x32xf32> to vector<16x32xf32>
    %187 = arith.addf %184, %186 : vector<16x32xf32>
    %188 = arith.addf %140, %187 : vector<16x32xf32>
    %c0_94 = arith.constant 0 : index
    %c0_95 = arith.constant 0 : index
    %c0_96 = arith.constant 0 : index
    %189 = vector.load %arg20[%c0_94, %c0_95, %c0_96] : memref<1x16x32xf32, #tpu.memory_space<vmem>>, vector<1x16x32xf32>
    %190 = vector.shape_cast %189 : vector<1x16x32xf32> to vector<16x32xf32>
    %191 = vector.shape_cast %188 : vector<16x32xf32> to vector<1x16x32xf32>
    tpu.vector_store %arg20[%c0_94, %c0_95, %c0_96], %191 {strides = array<i32>} : memref<1x16x32xf32, #tpu.memory_space<vmem>>, vector<1x16x32xf32>,
    return
  }
  func.func @transform_0(%arg0: i32) -> (i32, i32, i32) {
    %c0_i32 = arith.constant 0 : i32
    %c0_i32_0 = arith.constant 0 : i32
    %c0_i32_1 = arith.constant 0 : i32
    return %arg0, %c0_i32, %c0_i32_0 : i32, i32, i32
  }
  func.func @transform_1(%arg0: i32) -> (i32, i32, i32, i32) {
    %c0_i32 = arith.constant 0 : i32
    %c0_i32_0 = arith.constant 0 : i32
    %c0_i32_1 = arith.constant 0 : i32
    %c0_i32_2 = arith.constant 0 : i32
    return %arg0, %c0_i32, %c0_i32_0, %c0_i32_1 : i32, i32, i32, i32
  }
  func.func @transform_2(%arg0: i32) -> (i32, i32) {
    %c0_i32 = arith.constant 0 : i32
    %c0_i32_0 = arith.constant 0 : i32
    %c0_i32_1 = arith.constant 0 : i32
    return %c0_i32, %c0_i32_0 : i32, i32
  }
  func.func @transform_3(%arg0: i32) -> (i32, i32) {
    %c0_i32 = arith.constant 0 : i32
    %c0_i32_0 = arith.constant 0 : i32
    %c0_i32_1 = arith.constant 0 : i32
    return %c0_i32, %c0_i32_0 : i32, i32
  }
  func.func @transform_4(%arg0: i32) -> (i32, i32) {
    %c0_i32 = arith.constant 0 : i32
    %c0_i32_0 = arith.constant 0 : i32
    %c0_i32_1 = arith.constant 0 : i32
    return %c0_i32, %c0_i32_0 : i32, i32
  }
  func.func @transform_5(%arg0: i32) -> (i32, i32) {
    %c0_i32 = arith.constant 0 : i32
    %c0_i32_0 = arith.constant 0 : i32
    %c0_i32_1 = arith.constant 0 : i32
    return %c0_i32, %c0_i32_0 : i32, i32
  }
  func.func @transform_6(%arg0: i32) -> (i32, i32) {
    %c0_i32 = arith.constant 0 : i32
    %c0_i32_0 = arith.constant 0 : i32
    %c0_i32_1 = arith.constant 0 : i32
    return %c0_i32, %c0_i32_0 : i32, i32
  }
  func.func @transform_7(%arg0: i32) -> (i32, i32) {
    %c0_i32 = arith.constant 0 : i32
    %c0_i32_0 = arith.constant 0 : i32
    %c0_i32_1 = arith.constant 0 : i32
    return %c0_i32, %c0_i32_0 : i32, i32
  }
  func.func @transform_8(%arg0: i32) -> (i32, i32) {
    %c0_i32 = arith.constant 0 : i32
    %c0_i32_0 = arith.constant 0 : i32
    %c0_i32_1 = arith.constant 0 : i32
    return %c0_i32, %c0_i32_0 : i32, i32
  }
  func.func @transform_9(%arg0: i32) -> (i32, i32) {
    %c0_i32 = arith.constant 0 : i32
    %c0_i32_0 = arith.constant 0 : i32
    %c0_i32_1 = arith.constant 0 : i32
    return %c0_i32, %c0_i32_0 : i32, i32
  }
  func.func @transform_10(%arg0: i32) -> (i32, i32) {
    %c0_i32 = arith.constant 0 : i32
    %c0_i32_0 = arith.constant 0 : i32
    %c0_i32_1 = arith.constant 0 : i32
    return %c0_i32, %c0_i32_0 : i32, i32
  }
  func.func @transform_11(%arg0: i32) -> (i32, i32) {
    %c0_i32 = arith.constant 0 : i32
    %c0_i32_0 = arith.constant 0 : i32
    %c0_i32_1 = arith.constant 0 : i32
    return %c0_i32, %c0_i32_0 : i32, i32
  }
  func.func @transform_12(%arg0: i32) -> (i32, i32) {
    %c0_i32 = arith.constant 0 : i32
    %c0_i32_0 = arith.constant 0 : i32
    %c0_i32_1 = arith.constant 0 : i32
    return %c0_i32, %c0_i32_0 : i32, i32
  }
  func.func @transform_13(%arg0: i32) -> (i32, i32) {
    %c0_i32 = arith.constant 0 : i32
    %c0_i32_0 = arith.constant 0 : i32
    %c0_i32_1 = arith.constant 0 : i32
    return %c0_i32, %c0_i32_0 : i32, i32
  }
  func.func @transform_14(%arg0: i32) -> (i32, i32) {
    %c0_i32 = arith.constant 0 : i32
    %c0_i32_0 = arith.constant 0 : i32
    %c0_i32_1 = arith.constant 0 : i32
    return %c0_i32, %c0_i32_0 : i32, i32
  }
  func.func @transform_15(%arg0: i32) -> (i32, i32) {
    %c0_i32 = arith.constant 0 : i32
    %c0_i32_0 = arith.constant 0 : i32
    %c0_i32_1 = arith.constant 0 : i32
    return %c0_i32, %c0_i32_0 : i32, i32
  }
  func.func @transform_16(%arg0: i32) -> (i32, i32) {
    %c0_i32 = arith.constant 0 : i32
    %c0_i32_0 = arith.constant 0 : i32
    %c0_i32_1 = arith.constant 0 : i32
    return %c0_i32, %c0_i32_0 : i32, i32
  }
  func.func @transform_17(%arg0: i32) -> (i32, i32) {
    %c0_i32 = arith.constant 0 : i32
    %c0_i32_0 = arith.constant 0 : i32
    %c0_i32_1 = arith.constant 0 : i32
    return %c0_i32, %c0_i32_0 : i32, i32
  }
  func.func @transform_18(%arg0: i32) -> (i32, i32) {
    %c0_i32 = arith.constant 0 : i32
    %c0_i32_0 = arith.constant 0 : i32
    %c0_i32_1 = arith.constant 0 : i32
    return %c0_i32, %c0_i32_0 : i32, i32
  }
  func.func @transform_19(%arg0: i32) -> (i32, i32, i32) {
    %c0_i32 = arith.constant 0 : i32
    %c0_i32_0 = arith.constant 0 : i32
    %c0_i32_1 = arith.constant 0 : i32
    return %arg0, %c0_i32, %c0_i32_0 : i32, i32, i32
  }
}

</mosaic_0001>

<bundles_post_ra>
// kernel: gat_block_forward.1
= control target key start
LH: loop header
LB: loop body
LE: loop exit
PB: predicated region body
PF: predicated region fallthrough
CT: control target
= control target key end

     0   :  { %s4707_s0 = inlined_call_operand.vmem [shape: f32[2,16,32], index: 0, kind: input, shape index: {}]   ;;  %s4708_s1 = inlined_call_operand.vmem [shape: f32[2,4,16,16], index: 1, kind: input, shape index: {}]   ;;  %s4709_s2 = inlined_call_operand.hbm [shape: f32[16,16], index: 2, kind: input, shape index: {}]   ;;  %s4710_s3 = inlined_call_operand.hbm [shape: f32[16,16], index: 3, kind: input, shape index: {}]   ;;  %s4711_s4 = inlined_call_operand.hbm [shape: f32[1,32], index: 4, kind: input, shape index: {}]   ;;  %s4712_s5 = inlined_call_operand.hbm [shape: f32[1,32], index: 5, kind: input, shape index: {}]   ;;  %s4713_s6 = inlined_call_operand.vmem [shape: f32[32,96], index: 6, kind: input, shape index: {}]   ;;  %s4714_s7 = inlined_call_operand.hbm [shape: f32[32,32], index: 7, kind: input, shape index: {}]   ;;  %s4715_s8 = inlined_call_operand.hbm [shape: f32[1,32], index: 8, kind: input, shape index: {}]   ;;  %s4716_s9 = inlined_call_operand.hbm [shape: f32[32,32], index: 9, kind: input, shape index: {}]   ;;  %s4717_s10 = inlined_call_operand.hbm [shape: f32[1,32], index: 10, kind: input, shape index: {}]   ;;  %s4718_s11 = inlined_call_operand.hbm [shape: f32[32,32], index: 11, kind: input, shape index: {}]   ;;  %s4719_s12 = inlined_call_operand.hbm [shape: f32[1,32], index: 12, kind: input, shape index: {}]   ;;  %s4720_s13 = inlined_call_operand.hbm [shape: f32[1,32], index: 13, kind: input, shape index: {}]   ;;  %s4721_s14 = inlined_call_operand.hbm [shape: f32[1,32], index: 14, kind: input, shape index: {}]   ;;  %s4722_s15 = inlined_call_operand.hbm [shape: f32[32,128], index: 15, kind: input, shape index: {}]   ;;  %s4723_s16 = inlined_call_operand.hbm [shape: f32[1,128], index: 16, kind: input, shape index: {}]   ;;  %s4724_s17 = inlined_call_operand.vmem [shape: f32[128,32], index: 17, kind: input, shape index: {}]   ;;  %s4725_s18 = inlined_call_operand.hbm [shape: f32[1,32], index: 18, kind: input, shape index: {}]   ;;  %s4726_s19 = inlined_call_operand.hbm [shape: f32[2,16,32], index: 19, kind: output, shape index: {}]  }
   0x1   :  { %4739 = sst [smem:[#allocation44_spill]] %s4707_s0 }
   0x2   :  { %4740 = sst [smem:[#allocation45_spill]] %s4708_s1 }
   0x3   :  { %4741 = sst [smem:[#allocation46_spill]] %s4709_s2 }
   0x4   :  { %4742 = sst [smem:[#allocation47_spill]] %s4710_s3 }
   0x5   :  { %4743 = sst [smem:[#allocation48_spill]] %s4726_s19 }
   0x6   :  { %24 = vsyncpa [#allocation3], 0 }
   0x7   :  { %25 = vsyncpa [#allocation6], 0 }
   0x8   :  { %26 = vsyncpa [#allocation9], 0 }
   0x9   :  { %27 = vsyncpa [#allocation12], 0 }
   0xa   :  { %28 = vsyncpa [#allocation15], 0 }
   0xb   :  { %29 = vsyncpa [#allocation18], 0 }
   0xc   :  { %30 = vsyncpa [#allocation21], 0 }
   0xd   :  { %31 = vsyncpa [#allocation24], 0 }
   0xe   :  { %32 = vsyncpa [#allocation4], 0 }
   0xf   :  { %34 = vsyncpa [#allocation4 + $0x1], 0  ;;  %s4198_s0 = smov 0   ;;  %s4200_s30 = smov 0  }
  0x10   :  { %s4202_s20 = smov 0   ;;  %s4204_s21 = smov 0  }
  0x11 LB: > { %4744 = sst [smem:[#allocation36_spill]] %s4053_s0  ;;  %s4219_s1 = sadd.s32 4294967295, %s4065_s21   ;;  %s4065_s21 = sphi %s4204_s21, %s4785_s21   ;;  %s4061_s20 = sphi %s4202_s20, %s4788_s20   ;;  %s4057_s30 = sphi %s4200_s30, %s4787_s30   ;;  %s4053_s0 = sphi %s4198_s0, %s4786_s0  }
  0x12   : > { %4745 = sst [smem:[#allocation37_spill]] %s4057_s30  ;;  %s2965_s22 = sadd.s32 4294967294, %s4065_s21  }
  0x13   : > { %4746 = sst [smem:[#allocation38_spill]] %s4061_s20  ;;  %s4223_s2 = sadd.s32 1, %s4065_s21  }
  0x14   : > { %4747 = sst [smem:[#allocation39_spill]] %s4065_s21  ;;  %s456_s23 = sadd.s32 1, %s4061_s20 }
  0x15   : > { %4748 = sst [smem:[#allocation40_spill]] %s4223_s2  ;;  %s453_s24 = ssub.s32 %s4065_s21, %s4223_s2 }
  0x16   : > { %p466_p0 = scmp.ne.s32.totalorder %s4061_s20, %s4057_s30  ;;  %p454_p1 = scmp.eq.s32.totalorder %s453_s24, 0 }
  0x17   : > { %p467_p2 = scmp.eq.s32.totalorder %s4219_s1, 1  ;;  %p472_p3 = scmp.ne.s32.totalorder %s4057_s30, %s4053_s0 }
  0x18   : > { %p473_p4 = scmp.eq.s32.totalorder %s2965_s22, 1  ;;  %p2966_p7 = scmp.ge.s32.totalorder %s4065_s21, 1 }
  0x19   : > { %s4234_s25 = scalar_select %p454_p1, %s4061_s20, %s456_s23  }
  0x1a   : > { %p4236_p5 = por %p467_p2, %p466_p0  ;;  %p4240_p6 = por %p473_p4, %p472_p3 }
  0x1b   : > { %4749 = sst [smem:[#allocation41_spill]] %s4234_s25  ;;  %p480_p8 = scmp.lt.s32.totalorder %s4065_s21, 3 }
  0x1c   : > { %s4750_s3 = scalar_select %p4236_p5, 1, 0 }
  0x1d   : > { %s4752_s26 = scalar_select %p4240_p6, 1, 0 }
  0x1e   : > { %4751 = sst [smem:[#allocation42_spill]] %s4750_s3  ;;  %p4737_p9 = scmp.eq.s32.totalorder %s4219_s1, 0 }
  0x1f   : > { %4753 = sst [smem:[#allocation43_spill]] %s4752_s26  ;;  %p4247_p10 = pnand %p2966_p7, %p480_p8 }
  0x20   : > { %s4067_s28 = smov [#allocation5]   ;;  %s4068_s23 = smov [#allocation8]  }
  0x21   : > { %p3396_p11 = pneg %p4247_p10  ;;  %s505_s29 = sshll.u32 %s4067_s28, 4  ;;  %s506_s29 = int_to_ptr.vmem [resolvable:$true] %s505_s29 }
  0x22   : > { %s530_s24 = sshll.u32 %s4068_s23, 4  ;;  %s4069_s25 = smov [#allocation11]   ;;  %s531_s24 = int_to_ptr.vmem [resolvable:$true] %s530_s24 }
  0x23   : > { %p4255_p12 = pnand %p4737_p9, %p3396_p11  ;;  %s557_s20 = sshll.u32 %s4069_s25, 4  ;;  %s558_s20 = int_to_ptr.vmem [resolvable:$true] %s557_s20 }
  0x24   : > { %s3594_s26 = scalar_lea.vmem %s506_s29, 256  ;;  %p3602_p3 = scmp.lt.s32.totalorder %s506_s29, %s506_s29 }
  0x25   : > { %p4261_p13 = pneg %p4255_p12  ;;  %p3595_p0 = scmp.ne.s32.totalorder %s506_s29, %s3594_s26 }
  0x26   : > { %p3603_p4 = scmp.lt.s32.totalorder %s3594_s26, %s3594_s26 }
  0x27   : > { %p3597_p1 = pnand %p3595_p0, %p4261_p13 }
  0x28   : > { %p3604_p7 = por %p3603_p4, %p3602_p3 }
  0x29   : > { %p3598_p2 = pneg %p3597_p1 }
  0x2b   : > { %p3605_p8 = pnand %p3604_p7, %p3598_p2 }
  0x2d   : > { %3608 = shalt.err (!%p3605_p8)
}
  0x2e   : > { %s4070_s28 = smov 128   ;;  %s4071_s25 = smov 8  }
  0x2f   : > { %s4757_s21 = sld [smem:[#allocation47_spill]]  ;;  %s3620_s19 = scalar_lea.vmem %s531_s24, 16 }
  0x30   : > { %p3621_p11 = scmp.ne.s32.totalorder %s531_s24, %s3620_s19  ;;  %s3627_s26 = scalar_lea.vmem %s531_s24, 32 }
  0x31   : > { %p3628_p2 = scmp.lt.s32.totalorder %s531_s24, %s531_s24  ;;  %p3629_p3 = scmp.lt.s32.totalorder %s3627_s26, %s3620_s19 }
  0x32   : > { %p3623_p0 = pnand %p3621_p11, %p4261_p13 }
  0x33   : > { %p3630_p4 = por %p3629_p3, %p3628_p2 }
  0x34   : > { %p3624_p1 = pneg %p3623_p0 }
  0x35   : > { %3402 = dma.hbm_to_vmem [thread:$0]  (!%p4255_p12), %s4757_s21, 256, %s506_s29, [#allocation6], %s4070_s28, %s4070_s28, %s4071_s25  }
  0x36   : > { %p3631_p7 = pnand %p3630_p4, %p3624_p1 }
  0x38   : > { %3634 = shalt.err (!%p3631_p7)
}
  0x39   : > { %3408 = dma.hbm_to_vmem [thread:$0]  (!%p4255_p12), %s4712_s5, 16, %s531_s24, [#allocation9]  }
  0x3a   : > { %s3646_s0 = scalar_lea.vmem %s558_s20, 16  ;;  %s3653_s21 = scalar_lea.vmem %s558_s20, 32 }
  0x3b   : > { %p3647_p8 = scmp.ne.s32.totalorder %s558_s20, %s3646_s0  ;;  %p3654_p0 = scmp.lt.s32.totalorder %s558_s20, %s558_s20 }
  0x3c   : > { %p3655_p6 = scmp.lt.s32.totalorder %s3653_s21, %s3646_s0 }
  0x3d   : > { %p3649_p9 = pnand %p3647_p8, %p4261_p13 }
  0x3e   : > { %p3656_p5 = por %p3655_p6, %p3654_p0 }
  0x3f   : > { %p3650_p11 = pneg %p3649_p9 }
  0x41   : > { %p3657_p2 = pnand %p3656_p5, %p3650_p11 }
  0x43   : > { %3660 = shalt.err (!%p3657_p2)
}
  0x44   : > { %3414 = dma.hbm_to_vmem [thread:$0]  (!%p4255_p12), %s4715_s8, 16, %s558_s20, [#allocation12]  }
  0x45   : > { %s4072_s30 = smov [#allocation14]   ;;  %s4073_s24 = smov [#allocation17]  }
  0x46   : > { %s581_s3 = sshll.u32 %s4072_s30, 4  ;;  %s605_s23 = sshll.u32 %s4073_s24, 4  ;;  %s582_s3 = int_to_ptr.vmem [resolvable:$true] %s581_s3  ;;  %s606_s23 = int_to_ptr.vmem [resolvable:$true] %s605_s23 }
  0x47   : > { %s3672_s26 = scalar_lea.vmem %s582_s3, 16  ;;  %s3679_s0 = scalar_lea.vmem %s582_s3, 32 }
  0x48   : > { %p3673_p9 = scmp.ne.s32.totalorder %s582_s3, %s3672_s26  ;;  %p3680_p5 = scmp.lt.s32.totalorder %s582_s3, %s582_s3 }
  0x49   : > { %p3681_p6 = scmp.lt.s32.totalorder %s3679_s0, %s3672_s26 }
  0x4a   : > { %p3675_p1 = pnand %p3673_p9, %p4261_p13 }
  0x4b   : > { %p3682_p4 = por %p3681_p6, %p3680_p5 }
  0x4c   : > { %p3676_p3 = pneg %p3675_p1 }
  0x4e   : > { %p3683_p7 = pnand %p3682_p4, %p3676_p3 }
  0x50   : > { %3686 = shalt.err (!%p3683_p7)
}
  0x51   : > { %3420 = dma.hbm_to_vmem [thread:$0]  (!%p4255_p12), %s4717_s10, 16, %s582_s3, [#allocation15]  }
  0x52   : > { %s3698_s19 = scalar_lea.vmem %s606_s23, 16  ;;  %s3705_s29 = scalar_lea.vmem %s606_s23, 32 }
  0x53   : > { %p3699_p8 = scmp.ne.s32.totalorder %s606_s23, %s3698_s19  ;;  %p3706_p2 = scmp.lt.s32.totalorder %s606_s23, %s606_s23 }
  0x54   : > { %p3707_p9 = scmp.lt.s32.totalorder %s3705_s29, %s3698_s19 }
  0x55   : > { %p3701_p11 = pnand %p3699_p8, %p4261_p13 }
  0x56   : > { %p3708_p1 = por %p3707_p9, %p3706_p2 }
  0x57   : > { %p3702_p0 = pneg %p3701_p11 }
  0x59   : > { %p3709_p5 = pnand %p3708_p1, %p3702_p0 }
  0x5b   : > { %3712 = shalt.err (!%p3709_p5)
}
  0x5c   : > { %3426 = dma.hbm_to_vmem [thread:$0]  (!%p4255_p12), %s4719_s12, 16, %s606_s23, [#allocation18]  }
  0x5d   : > { %s4074_s3 = smov [#allocation20]   ;;  %s4075_s0 = smov [#allocation23]  }
  0x5e   : > { %s627_s26 = sshll.u32 %s4074_s3, 4  ;;  %s651_s21 = sshll.u32 %s4075_s0, 4  ;;  %s628_s26 = int_to_ptr.vmem [resolvable:$true] %s627_s26  ;;  %s652_s21 = int_to_ptr.vmem [resolvable:$true] %s651_s21 }
  0x5f   : > { %s3724_s20 = scalar_lea.vmem %s628_s26, 16  ;;  %s3731_s19 = scalar_lea.vmem %s628_s26, 32 }
  0x60   : > { %p3725_p3 = scmp.ne.s32.totalorder %s628_s26, %s3724_s20  ;;  %p3732_p7 = scmp.lt.s32.totalorder %s628_s26, %s628_s26 }
  0x61   : > { %p3733_p8 = scmp.lt.s32.totalorder %s3731_s19, %s3724_s20 }
  0x62   : > { %p3727_p6 = pnand %p3725_p3, %p4261_p13 }
  0x63   : > { %p3734_p11 = por %p3733_p8, %p3732_p7 }
  0x64   : > { %p3728_p4 = pneg %p3727_p6 }
  0x66   : > { %p3735_p0 = pnand %p3734_p11, %p3728_p4 }
  0x68   : > { %3738 = shalt.err (!%p3735_p0)
}
  0x69   : > { %3432 = dma.hbm_to_vmem [thread:$0]  (!%p4255_p12), %s4721_s14, 16, %s628_s26, [#allocation21]  }
  0x6a   : > { %s3750_s30 = scalar_lea.vmem %s652_s21, 16  ;;  %s3757_s24 = scalar_lea.vmem %s652_s21, 32 }
  0x6b   : > { %p3751_p2 = scmp.ne.s32.totalorder %s652_s21, %s3750_s30  ;;  %p3758_p5 = scmp.lt.s32.totalorder %s652_s21, %s652_s21 }
  0x6c   : > { %p3759_p3 = scmp.lt.s32.totalorder %s3757_s24, %s3750_s30 }
  0x6d   : > { %p3753_p9 = pnand %p3751_p2, %p4261_p13 }
  0x6e   : > { %p3760_p6 = por %p3759_p3, %p3758_p5 }
  0x6f   : > { %p3754_p1 = pneg %p3753_p9 }
  0x71   : > { %p3761_p7 = pnand %p3760_p6, %p3754_p1 }
  0x73   : > { %3764 = shalt.err (!%p3761_p7)
}
  0x74   : > { %3438 = dma.hbm_to_vmem [thread:$0]  (!%p4255_p12), %s4723_s16, 16, %s652_s21, [#allocation24]  }
  0x75   : > { %s4076_s26 = smov [#allocation2]   ;;  %s4077_s19 = smov [#allocation7]  }
  0x76   : > { %s492_s20 = sshll.u32 %s4076_s26, 4  ;;  %s519_s29 = sshll.u32 %s4077_s19, 4  ;;  %s493_s20 = int_to_ptr.vmem [resolvable:$true] %s492_s20  ;;  %s520_s29 = int_to_ptr.vmem [resolvable:$true] %s519_s29 }
  0x77   : > { %s3776_s23 = scalar_lea.vmem %s493_s20, 256  ;;  %p3784_p0 = scmp.lt.s32.totalorder %s493_s20, %s493_s20 }
  0x78   : > { %p3777_p4 = scmp.ne.s32.totalorder %s493_s20, %s3776_s23  ;;  %p3785_p2 = scmp.lt.s32.totalorder %s3776_s23, %s3776_s23 }
  0x7a   : > { %p3779_p8 = pnand %p3777_p4, %p4261_p13  ;;  %p3786_p9 = por %p3785_p2, %p3784_p0 }
  0x7c   : > { %p3780_p11 = pneg %p3779_p8 }
  0x7e   : > { %p3787_p1 = pnand %p3786_p9, %p3780_p11 }
  0x80   : > { %3790 = shalt.err (!%p3787_p1)
}
  0x81   : > { %s4758_s24 = sld [smem:[#allocation46_spill]]  ;;  %s3802_s3 = scalar_lea.vmem %s520_s29, 16 }
  0x82   : > { %p3803_p5 = scmp.ne.s32.totalorder %s520_s29, %s3802_s3  ;;  %s3809_s0 = scalar_lea.vmem %s520_s29, 32 }
  0x83   : > { %p3810_p7 = scmp.lt.s32.totalorder %s520_s29, %s520_s29  ;;  %p3811_p4 = scmp.lt.s32.totalorder %s3809_s0, %s3802_s3 }
  0x84   : > { %p3805_p3 = pnand %p3803_p5, %p4261_p13 }
  0x85   : > { %p3812_p8 = por %p3811_p4, %p3810_p7 }
  0x86   : > { %p3806_p6 = pneg %p3805_p3 }
  0x87   : > { %3399 = dma.hbm_to_vmem [thread:$0]  (!%p4255_p12), %s4758_s24, 256, %s493_s20, [#allocation3], %s4070_s28, %s4070_s28, %s4071_s25  }
  0x88   : > { %p3813_p11 = pnand %p3812_p8, %p3806_p6 }
  0x8a   : > { %3816 = shalt.err (!%p3813_p11)
}
  0x8b   : > { %3405 = dma.hbm_to_vmem [thread:$0]  (!%p4255_p12), %s4711_s4, 16, %s520_s29, [#allocation6]  }
  0x8c   : > { %s4078_s20 = smov [#allocation10]   ;;  %s4079_s21 = smov [#allocation13]  }
  0x8d   : > { %s543_s23 = sshll.u32 %s4078_s20, 4  ;;  %s567_s30 = sshll.u32 %s4079_s21, 4  ;;  %s544_s23 = int_to_ptr.vmem [resolvable:$true] %s543_s23  ;;  %s568_s30 = int_to_ptr.vmem [resolvable:$true] %s567_s30 }
  0x8e   : > { %s3828_s24 = scalar_lea.vmem %s544_s23, 512  ;;  %p3836_p1 = scmp.lt.s32.totalorder %s544_s23, %s544_s23 }
  0x8f   : > { %p3829_p0 = scmp.ne.s32.totalorder %s544_s23, %s3828_s24  ;;  %p3837_p5 = scmp.lt.s32.totalorder %s3828_s24, %s3828_s24 }
  0x91   : > { %p3831_p2 = pnand %p3829_p0, %p4261_p13  ;;  %p3838_p3 = por %p3837_p5, %p3836_p1 }
  0x93   : > { %p3832_p9 = pneg %p3831_p2 }
  0x95   : > { %p3839_p6 = pnand %p3838_p3, %p3832_p9 }
  0x97   : > { %3842 = shalt.err (!%p3839_p6)
}
  0x98   : > { %3411 = dma.hbm_to_vmem [thread:$0]  (!%p4255_p12), %s4714_s7, 512, %s544_s23, [#allocation9], %s4070_s28, %s4070_s28, %s4071_s25  }
  0x99   : > { %s3854_s0 = scalar_lea.vmem %s568_s30, 512  ;;  %p3862_p11 = scmp.lt.s32.totalorder %s568_s30, %s568_s30 }
  0x9a   : > { %p3855_p7 = scmp.ne.s32.totalorder %s568_s30, %s3854_s0  ;;  %p3863_p0 = scmp.lt.s32.totalorder %s3854_s0, %s3854_s0 }
  0x9c   : > { %p3857_p4 = pnand %p3855_p7, %p4261_p13  ;;  %p3864_p2 = por %p3863_p0, %p3862_p11 }
  0x9e   : > { %p3858_p8 = pneg %p3857_p4 }
  0xa0   : > { %p3865_p9 = pnand %p3864_p2, %p3858_p8 }
  0xa2   : > { %3868 = shalt.err (!%p3865_p9)
}
  0xa3   : > { %3417 = dma.hbm_to_vmem [thread:$0]  (!%p4255_p12), %s4716_s9, 512, %s568_s30, [#allocation12], %s4070_s28, %s4070_s28, %s4071_s25  }
  0xa4   : > { %s4080_s20 = smov [#allocation16]   ;;  %s4081_s21 = smov [#allocation19]  }
  0xa5   : > { %s591_s23 = sshll.u32 %s4080_s20, 4  ;;  %s616_s24 = sshll.u32 %s4081_s21, 4  ;;  %s592_s23 = int_to_ptr.vmem [resolvable:$true] %s591_s23  ;;  %s617_s24 = int_to_ptr.vmem [resolvable:$true] %s616_s24 }
  0xa6   : > { %s3880_s29 = scalar_lea.vmem %s592_s23, 512  ;;  %p3888_p6 = scmp.lt.s32.totalorder %s592_s23, %s592_s23 }
  0xa7   : > { %p3881_p1 = scmp.ne.s32.totalorder %s592_s23, %s3880_s29  ;;  %p3889_p7 = scmp.lt.s32.totalorder %s3880_s29, %s3880_s29 }
  0xa9   : > { %p3883_p5 = pnand %p3881_p1, %p4261_p13  ;;  %p3890_p4 = por %p3889_p7, %p3888_p6 }
  0xab   : > { %p3884_p3 = pneg %p3883_p5 }
  0xad   : > { %p3891_p8 = pnand %p3890_p4, %p3884_p3 }
  0xaf   : > { %3894 = shalt.err (!%p3891_p8)
}
  0xb0   : > { %3423 = dma.hbm_to_vmem [thread:$0]  (!%p4255_p12), %s4718_s11, 512, %s592_s23, [#allocation15], %s4070_s28, %s4070_s28, %s4071_s25  }
  0xb1   : > { %s3906_s0 = scalar_lea.vmem %s617_s24, 16  ;;  %s3913_s26 = scalar_lea.vmem %s617_s24, 32 }
  0xb2   : > { %p3907_p11 = scmp.ne.s32.totalorder %s617_s24, %s3906_s0  ;;  %p3914_p9 = scmp.lt.s32.totalorder %s617_s24, %s617_s24 }
  0xb3   : > { %p3915_p1 = scmp.lt.s32.totalorder %s3913_s26, %s3906_s0 }
  0xb4   : > { %p3909_p0 = pnand %p3907_p11, %p4261_p13 }
  0xb5   : > { %p3916_p5 = por %p3915_p1, %p3914_p9 }
  0xb6   : > { %p3910_p2 = pneg %p3909_p0 }
  0xb8   : > { %p3917_p3 = pnand %p3916_p5, %p3910_p2 }
  0xba   : > { %3920 = shalt.err (!%p3917_p3)
}
  0xbb   : > { %3429 = dma.hbm_to_vmem [thread:$0]  (!%p4255_p12), %s4720_s13, 16, %s617_s24, [#allocation18]  }
  0xbc   : > { %s4082_s23 = smov [#allocation22]   ;;  %s4083_s29 = smov [#allocation25]  }
  0xbd   : > { %s637_s21 = sshll.u32 %s4082_s23, 4  ;;  %s665_s30 = sshll.u32 %s4083_s29, 4  ;;  %s638_s21 = int_to_ptr.vmem [resolvable:$true] %s637_s21  ;;  %s666_s30 = int_to_ptr.vmem [resolvable:$true] %s665_s30 }
  0xbe   : > { %s3932_s3 = scalar_lea.vmem %s638_s21, 512  ;;  %p3940_p8 = scmp.lt.s32.totalorder %s638_s21, %s638_s21 }
  0xbf   : > { %p3933_p6 = scmp.ne.s32.totalorder %s638_s21, %s3932_s3  ;;  %p3941_p11 = scmp.lt.s32.totalorder %s3932_s3, %s3932_s3 }
  0xc1   : > { %p3935_p7 = pnand %p3933_p6, %p4261_p13  ;;  %p3942_p0 = por %p3941_p11, %p3940_p8 }
  0xc3   : > { %p3936_p4 = pneg %p3935_p7 }
  0xc5   : > { %p3943_p2 = pnand %p3942_p0, %p3936_p4 }
  0xc7   : > { %3946 = shalt.err (!%p3943_p2)
}
  0xc8   : > { %3435 = dma.hbm_to_vmem [thread:$0]  (!%p4255_p12), %s4722_s15, 512, %s638_s21, [#allocation21], %s4070_s28, %s4070_s28, %s4071_s25  }
  0xc9   : > { %s3958_s26 = scalar_lea.vmem %s666_s30, 16  ;;  %s3965_s19 = scalar_lea.vmem %s666_s30, 32 }
  0xca   : > { %p3959_p9 = scmp.ne.s32.totalorder %s666_s30, %s3958_s26  ;;  %p3966_p3 = scmp.lt.s32.totalorder %s666_s30, %s666_s30 }
  0xcb   : > { %p3967_p6 = scmp.lt.s32.totalorder %s3965_s19, %s3958_s26 }
  0xcc   : > { %p3961_p1 = pnand %p3959_p9, %p4261_p13 }
  0xcd   : > { %p3968_p7 = por %p3967_p6, %p3966_p3 }
  0xce   : > { %p3962_p5 = pneg %p3961_p1 }
  0xd0   : > { %p3969_p4 = pnand %p3968_p7, %p3962_p5 }
  0xd2   : > { %3972 = shalt.err (!%p3969_p4)
}
  0xd3   : > { %3441 = dma.hbm_to_vmem [thread:$0]  (!%p4255_p12), %s4725_s18, 16, %s666_s30, [#allocation24]  }
  0xd4   : > { %694 = sbr.rel (%p4247_p10) target bundleno = 3867 (0xf1b), region = 96  ;;  %p4759_p8 = scmp.eq.s32.totalorder (!%p4247_p10), %s4219_s1, 0 }
  0xd9   : > { %4016 = dma.done.wait (%p4759_p8), [#allocation3], 256   ;;  %p4760_p13 = pmov %p4759_p8 }
  0xda   : > { %p4761_p11 = pmov %p4759_p8 }
  0xdb   : > { %4018 = vsyncadd (%p4760_p13), [#allocation3], 4294967040 }
  0xdc   : > { %4020 = dma.done.wait (%p4761_p11), [#allocation6], 272   ;;  %p4762_p0 = pmov %p4759_p8 }
  0xde   : > { %4022 = vsyncadd (%p4762_p0), [#allocation6], 4294967024  ;;  %p4763_p2 = pmov %p4762_p0 }
  0xdf   : > { %p4764_p12 = pmov %p4762_p0 }
  0xe0   : > { %4024 = dma.done.wait (%p4763_p2), [#allocation9], 528  }
  0xe1   : > { %4026 = vsyncadd (%p4764_p12), [#allocation9], 4294966768  ;;  %p4765_p10 = pmov %p4762_p0 }
  0xe2   : > { %p4766_p9 = pmov %p4762_p0 }
  0xe3   : > { %4028 = dma.done.wait (%p4765_p10), [#allocation12], 528  }
  0xe4   : > { %4030 = vsyncadd (%p4766_p9), [#allocation12], 4294966768  ;;  %p4767_p1 = pmov %p4762_p0 }
  0xe5   : > { %p4768_p5 = pmov %p4762_p0 }
  0xe6   : > { %4032 = dma.done.wait (%p4767_p1), [#allocation15], 528  }
  0xe7   : > { %4034 = vsyncadd (%p4768_p5), [#allocation15], 4294966768  ;;  %p4769_p3 = pmov %p4762_p0 }
  0xe8   : > { %p4770_p6 = pmov %p4762_p0 }
  0xe9   : > { %4036 = dma.done.wait (%p4769_p3), [#allocation18], 32  }
  0xea   : > { %4038 = vsyncadd (%p4770_p6), [#allocation18], 4294967264  ;;  %p4771_p7 = pmov %p4762_p0 }
  0xeb   : > { %p4772_p4 = pmov %p4762_p0 }
  0xec   : > { %4040 = dma.done.wait (%p4771_p7), [#allocation21], 528  }
  0xed   : > { %4042 = vsyncadd (%p4772_p4), [#allocation21], 4294966768  ;;  %p4773_p8 = pmov %p4762_p0 }
  0xee   : > { %p4774_p13 = pmov %p4762_p0 }
  0xef   : > { %4044 = dma.done.wait (%p4773_p8), [#allocation24], 32  }
  0xf0   : > { %4046 = vsyncadd (%p4774_p13), [#allocation24], 4294967264  ;;  %p811_p11 = scmp.lt.s32.totalorder %s4219_s1, 1  ;;  %s4775_s25 = sld [smem:[#allocation44_spill]]  ;;  %vm825_vm0 = vcmask 261120   ;;  %v872_v14 = vld [vmem:[%s4713_s6 + $0x18] sm:$0xff] }
  0xf1   : > { %v871_v15 = vld [vmem:[%s4713_s6 + $0x10] sm:$0xff]  ;;  %3165 = vmatprep.subr.mxu1 %v872_v14  ;;  %v870_v16 = vld [vmem:[%s4713_s6 + $0x8] sm:$0xff]  ;;  %v869_v17 = vld [vmem:[%s4713_s6] sm:$0xff]  ;;  %vm964_vm1 = vcmask 64512   ;;  %s4084_s23 = smov 96   ;;  %s4086_s22 = smov 88  }
  0xf2   : > { %s4424_s2 = scalar_select %p811_p11, %s4219_s1, 1  ;;  %3166 = vmatpush3.msra.mxu1 %v872_v14  ;;  %v3004_v25 = vld [vmem:[#allocation7] ss:$0 sm:$0xff]  ;;  %v3005_v27 = vld [vmem:[#allocation8] ss:$0 sm:$0xff]  ;;  %vm1054_vm2 = vcmask 130048  }
  0xf3   : > { %3167 = vmatprep.subr.mxu1 %v871_v15  ;;  %s4776_s29 = sld [smem:[#allocation45_spill]]  ;;  %s4088_s3 = smov 56  }
  0xf4   : > { %s3068_s27 = sshll.u32 %s4424_s2, 4  ;;  %3168 = vmatpush3.msra.mxu1 %v871_v15  ;;  %s3069_s28 = sshll.u32 %s4424_s2, 6 }
  0xf5   : > { %3169 = vmatprep.subr.mxu1 %v870_v16  ;;  %s4087_s2 = smov 64   ;;  %s4089_s24 = smov 80  }
  0xf6   : > { %s815_s21 = scalar_lea.vmem %s4775_s25, %s3068_s27  ;;  %3170 = vmatpush3.msra.mxu1 %v870_v16  ;;  %s4085_s27 = smov 120  }
  0xf7   : > { %v4430_v0 = vld [vmem:[%s815_s21] sm:$0xff]  ;;  %v4432_v1 = vld [vmem:[%s815_s21 + $0x8] sm:$0xff]  ;;  %3171 = vmatprep.subr.mxu1 %v869_v17  ;;  %s4090_s0 = smov 112   ;;  %s4091_s26 = smov 72  }
  0xf8   : > { %v826_v2 = vsel %vm825_vm0, %v4430_v0, 0.0  ;;  %v829_v3 = vsel %vm825_vm0, %v4432_v1, 0.0  ;;  %3172 = vmatpush3.msra.mxu1 %v869_v17  ;;  %s4092_s19 = smov 104   ;;  %s4093_s20 = smov 48  }
  0xf9   : > { %827 = vadd.xlane.f32.xlu0 %v826_v2  ;;  %s4490_s30 = scalar_lea.vmem %s4776_s29, %s3069_s28  ;;  %s4777_s28 = sld [smem:[#allocation37_spill]] }
  0xfa   : > { %v1051_v43 = vld [vmem:[%s4490_s30 + $0x8] sm:$0xff]  ;;  %v1050_v46 = vld [vmem:[%s4490_s30] sm:$0xff]  ;;  %v3018_v55 = vld [vmem:[%s4490_s30 + $0x10] sm:$0xff]  ;;  %s4778_s29 = sld [smem:[#allocation42_spill]] }
  0xfd   : > { %830 = vadd.xlane.f32.xlu0 %v829_v3 }
  0xff   : > { %s808_s25 = sand.u32 1, %s4777_s28  }
 0x100   : > { %s2999_s21 = sshll.u32 %s808_s25, 4  ;;  %p4780_p2 = scmp.ne.s32.totalorder %s4778_s29, 0 }
 0x182   : > { %v828_v4 = vpop.xlane.xlu0 %827 }
 0x183   : > { %v833_v5 = vmul.f32 0.03125, %v828_v4 }
 0x185   : > { %v835_v6 = vsub.f32 %v4430_v0, %v833_v5 }
 0x186   : > { %v831_v7 = vpop.xlane.xlu0 %830 }
 0x187   : > { %v834_v8 = vmul.f32 0.03125, %v831_v7  ;;  %v837_v9 = vmul.f32 %v835_v6, %v835_v6  ;;  %v3019_v7 = vld [vmem:[%s4490_s30 + $0x18] sm:$0xff] }
 0x189   : > { %v836_v10 = vsub.f32 %v4432_v1, %v834_v8  ;;  %v839_v11 = vsel %vm825_vm0, %v837_v9, 0.0 }
 0x18a   : > { %840 = vadd.xlane.f32.xlu1 %v839_v11 }
 0x18b   : > { %v838_v12 = vmul.f32 %v836_v10, %v836_v10 }
 0x18d   : > { %v842_v13 = vsel %vm825_vm0, %v838_v12, 0.0 }
 0x18e   : > { %843 = vadd.xlane.f32.xlu1 %v842_v13 }
 0x213   : > { %v841_v18 = vpop.xlane.xlu1 %840 }
 0x214   : > { %v845_v19 = vmul.f32 0.03125, %v841_v18 }
 0x216   : > { %v847_v20 = vadd.f32 1e-05, %v845_v19 }
 0x217   : > { %v844_v21 = vpop.xlane.xlu1 %843 }
 0x218   : > { %3539 = vrsqrt.f32 %v847_v20  ;;  %v846_v22 = vmul.f32 0.03125, %v844_v21 }
 0x21a   : > { %v848_v23 = vadd.f32 1e-05, %v846_v22 }
 0x21c   : > { %3541 = vrsqrt.f32 %v848_v23 }
 0x225   : > { %v3540_v24 = vpop.eup %3539 }
 0x226   : > { %v851_v26 = vmul.f32 %v3540_v24, %v835_v6 }
 0x228   : > { %v859_v28 = vmul.f32 %v3004_v25, %v851_v26 }
 0x229   : > { %v3542_v29 = vpop.eup %3541 }
 0x22a   : > { %v852_v30 = vmul.f32 %v3542_v29, %v836_v10  ;;  %v4454_v31 = vadd.f32 %v3005_v27, %v859_v28  ;;  %v954_v10 = vld [vmem:[#allocation10] sm:$0xff] }
 0x22c   : > { %v860_v32 = vmul.f32 %v3004_v25, %v852_v30  ;;  %3173 = vmatprep.mubr.msk.f32.mxu1 %vm825_vm0, %v4454_v31 }
 0x22e   : > { %v4458_v33 = vadd.f32 %v3005_v27, %v860_v32 }
 0x230   : > { %3174 = vmatmul.mubr.msk.f32.vlgmr.msra.gmra.mxu1 %vm825_vm0, %v4458_v33 }
 0x2f0   : > { %v4462_v34 = vpop.f32.mrf.mxu1 }
 0x2f1   : > { %962 = vrot.lane.b32.xlu0 %v4462_v34, %s4084_s23 }
 0x2f2   : > { %v4465_v35 = vpop.f32.mrf.mxu1 }
 0x2f3   : > { %960 = vrot.lane.b32.xlu1 %v4465_v35, %s4084_s23  ;;  %3180 = vmatprep.mubr.msk.f32.mxu1 %vm964_vm1, %v4465_v35  ;;  %s4094_s23 = smov 40  }
 0x2f5   : > { %1164 = vrot.lane.b32.xlu0 %v4465_v35, %s4085_s27 }
 0x2f7   : > { %1170 = vrot.lane.b32.xlu1 %v4462_v34, %s4086_s22 }
 0x2fb   : > { %1168 = vrot.lane.b32.xlu1 %v4465_v35, %s4086_s22 }
 0x2ff   : > { %1166 = vrot.lane.b32.xlu1 %v4462_v34, %s4085_s27 }
 0x363   : > { %v963_v36 = vpop.permute.xlu0 %962 }
 0x364   : > { %3176 = vmatprep.subr.msk.mxu1 %vm964_vm1, %v963_v36 }
 0x365   : > { %3177 = vmatpush3.xpose.msk.msra.mxu1 %vm964_vm1, %v963_v36  ;;  %v961_v37 = vpop.permute.xlu1 %960  ;;  %v955_v36 = vld [vmem:[#allocation10 + $0x8] sm:$0xff] }
 0x366   : > { %3178 = vmatprep.subr.msk.mxu1 %vm964_vm1, %v961_v37 }
 0x367   : > { %v1165_v39 = vpop.permute.xlu0 %1164 }
 0x369   : > { %3179 = vmatpush3.xpose.msk.msra.mxu1 %vm964_vm1, %v961_v37  ;;  %v1171_v38 = vpop.permute.xlu1 %1170 }
 0x36a   : > { %3190 = vmatprep.subr.msk.mxu1 %vm964_vm1, %v1171_v38 }
 0x36c   : > { %3181 = vmatmul.mubr.msk.f32.vlgmr.msra.gmra.mxu1 %vm964_vm1, %v4462_v34 }
 0x36d   : > { %v1169_v40 = vpop.permute.xlu1 %1168  ;;  %3191 = vmatpush3.xpose.msk.msra.mxu1 %vm964_vm1, %v1171_v38  ;;  %3194 = vmatprep.mubr.msk.f32.mxu1 %vm964_vm1, %v1165_v39 }
 0x36e   : > { %3192 = vmatprep.subr.msk.mxu1 %vm964_vm1, %v1169_v40 }
 0x371   : > { %3193 = vmatpush3.xpose.msk.msra.mxu1 %vm964_vm1, %v1169_v40  ;;  %v1167_v41 = vpop.permute.xlu1 %1166 }
 0x372   : > { %3209 = vmatprep.subr.mxu1 %v954_v10 }
 0x374   : > { %3195 = vmatmul.mubr.msk.f32.vlgmr.msra.gmra.mxu1 %vm964_vm1, %v1167_v41 }
 0x375   : > { %3210 = vmatpush3.msra.mxu1 %v954_v10 }
 0x42c   : > { %v3182_v42 = vpop.f32.mrf.mxu1 }
 0x42d   : > { %v1049_v44 = vmul.f32 0.35355338, %v3182_v42 }
 0x42e   : > { %v1039_v45 = vpop.f32.mrf.mxu1 }
 0x42f   : > { %v1048_v47 = vmul.f32 0.35355338, %v1039_v45  ;;  %v1053_v48 = vadd.f32 %v1051_v43, %v1049_v44 }
 0x431   : > { %v1058_v49 = vsel %vm1054_vm2, %v1053_v48, -inf  ;;  %v1052_v50 = vadd.f32 %v1050_v46, %v1048_v47 }
 0x432   : > { %1059 = vmax.xlane.f32.xlu1 %v1058_v49 }
 0x433   : > { %v1055_v51 = vsel %vm1054_vm2, %v1052_v50, -inf }
 0x434   : > { %1056 = vmax.xlane.f32.xlu0 %v1055_v51  ;;  %v3196_v52 = vpop.f32.mrf.mxu1 }
 0x435   : > { %v1256_v6 = vmul.f32 0.35355338, %v3196_v52  ;;  %v3031_v52 = vld [vmem:[%s4490_s30 + $0x28] sm:$0xff] }
 0x436   : > { %v1246_v53 = vpop.f32.mrf.mxu1 }
 0x437   : > { %v1255_v54 = vmul.f32 0.35355338, %v1246_v53  ;;  %v1261_v8 = vadd.f32 %v3019_v7, %v1256_v6 }
 0x439   : > { %v1260_v56 = vadd.f32 %v3018_v55, %v1255_v54  ;;  %v1265_v9 = vsel %vm1054_vm2, %v1261_v8, -inf  ;;  %v3030_v55 = vld [vmem:[%s4490_s30 + $0x20] sm:$0xff] }
 0x43b   : > { %v1262_v57 = vsel %vm1054_vm2, %v1260_v56, -inf }
 0x443   : > { %1077 = vrot.lane.b32.xlu1 %v4465_v35, %s4087_s2 }
 0x467   : > { %1263 = vmax.xlane.f32.xlu1 %v1262_v57 }
 0x478   : > { %1286 = vrot.lane.b32.xlu1 %v4462_v34, %s4088_s3 }
 0x47c   : > { %1284 = vrot.lane.b32.xlu1 %v4465_v35, %s4088_s3 }
 0x480   : > { %1537 = vrot.lane.b32.xlu1 %v4465_v35, %s4089_s24 }
 0x4bb   : > { %v1060_v58 = vpop.xlane.xlu1 %1059 }
 0x4bc   : > { %v1062_v59 = vsub.f32 %v1053_v48, %v1060_v58 }
 0x4bd   : > { %v1057_v60 = vpop.xlane.xlu0 %1056 }
 0x4be   : > { %v1065_v61 = vmul.f32 1.442695, %v1062_v59  ;;  %v1061_v62 = vsub.f32 %v1052_v50, %v1057_v60 }
 0x4bf   : > { %v1078_v11 = vpop.permute.xlu1 %1077 }
 0x4c0   : > { %3543 = vpow2.f32 %v1065_v61  ;;  %v1063_v63 = vmul.f32 1.442695, %v1061_v62 }
 0x4c2   : > { %3545 = vpow2.f32 %v1063_v63 }
 0x4cd   : > { %v3544_v2 = vpop.eup %3543 }
 0x4ce   : > { %v1070_v3 = vsel %vm1054_vm2, %v3544_v2, 0.0 }
 0x4cf   : > { %v3546_v4 = vpop.eup %3545  ;;  %1071 = vadd.xlane.f32.xlu0 %v1070_v3 }
 0x4d0   : > { %v1067_v5 = vsel %vm1054_vm2, %v3546_v4, 0.0 }
 0x4d3   : > { %1068 = vadd.xlane.f32.xlu0 %v1067_v5 }
 0x4e9   : > { %1079 = vrot.lane.b32.xlu0 %v4462_v34, %s4087_s2  ;;  %s810_s2 = scalar_lea.vmem [#allocation26], %s2999_s21 }
 0x4ea   : > { %s2746_s3 = sshll.u32 %s810_s2, 4  ;;  %s4662_s3 = int_to_ptr.vmem [resolvable:$true] %s2746_s3 }
 0x4f0   : > { %v1264_v12 = vpop.xlane.xlu1 %1263 }
 0x4f1   : > { %v1268_v13 = vsub.f32 %v1260_v56, %v1264_v12 }
 0x4f3   : > { %v1270_v14 = vmul.f32 1.442695, %v1268_v13 }
 0x4f4   : > { %v1287_v20 = vpop.permute.xlu1 %1286 }
 0x4f5   : > { %3547 = vpow2.f32 %v1270_v14 }
 0x4f8   : > { %v1285_v25 = vpop.permute.xlu1 %1284 }
 0x4fc   : > { %v1538_v40 = vpop.permute.xlu1 %1537 }
 0x502   : > { %v3548_v15 = vpop.eup %3547 }
 0x503   : > { %v1274_v16 = vsel %vm1054_vm2, %v3548_v15, 0.0 }
 0x508   : > { %1266 = vmax.xlane.f32.xlu0 %v1265_v9 }
 0x51e   : > { %1539 = vrot.lane.b32.xlu0 %v4462_v34, %s4089_s24 }
 0x53d   : > { %1275 = vadd.xlane.f32.xlu0 %v1274_v16 }
 0x553   : > { %1533 = vrot.lane.b32.xlu0 %v4465_v35, %s4090_s0 }
 0x557   : > { %1829 = vrot.lane.b32.xlu0 %v4462_v34, %s4091_s26 }
 0x558   : > { %v1072_v17 = vpop.xlane.xlu0 %1071 }
 0x559   : > { %3549 = vrcp.f32 %v1072_v17  ;;  %v3040_v17 = vld [vmem:[%s4490_s30 + $0x30] sm:$0xff] }
 0x55b   : > { %1823 = vrot.lane.b32.xlu0 %v4465_v35, %s4092_s19 }
 0x55c   : > { %v1069_v18 = vpop.xlane.xlu0 %1068 }
 0x55d   : > { %3551 = vrcp.f32 %v1069_v18 }
 0x560   : > { %v1080_v19 = vpop.permute.xlu0 %1079 }
 0x561   : > { %3183 = vmatprep.subr.mxu0 %v1080_v19 }
 0x562   : > { %3184 = vmatpush3.msra.mxu0 %v1080_v19  ;;  %v3041_v19 = vld [vmem:[%s4490_s30 + $0x38] sm:$0xff]  ;;  %s3070_s30 = sshll.u32 %s4219_s1, 8  ;;  %s4667_s1 = scalar_lea.sflag [#allocation4], %s808_s25 }
 0x563   : > { %3185 = vmatprep.subr.mxu0 %v1078_v11 }
 0x564   : > { %3186 = vmatpush3.msra.mxu0 %v1078_v11 }
 0x565   : > { %3197 = vmatprep.subr.mxu0 %v1287_v20 }
 0x566   : > { %v3550_v21 = vpop.eup %3549 }
 0x567   : > { %v1076_v24 = vmul.f32 %v3550_v21, %v3544_v2 }
 0x56a   : > { %v3552_v22 = vpop.eup %3551 }
 0x56b   : > { %v1075_v23 = vmul.f32 %v3552_v22, %v3546_v4 }
 0x56d   : > { %3187 = vmatprep.mubr.msk.f32.mxu0 %vm1054_vm2, %v1075_v23 }
 0x56e   : > { %3188 = vmatmul.mubr.msk.f32.vlgmr.msra.gmra.mxu0 %vm1054_vm2, %v1076_v24 }
 0x56f   : > { %3198 = vmatpush3.msra.mxu0 %v1287_v20 }
 0x570   : > { %3199 = vmatprep.subr.mxu0 %v1285_v25 }
 0x571   : > { %3200 = vmatpush3.msra.mxu0 %v1285_v25 }
 0x572   : > { %3204 = vmatprep.subr.mxu0 %v955_v36 }
 0x591   : > { %v1267_v26 = vpop.xlane.xlu0 %1266 }
 0x592   : > { %v1269_v27 = vsub.f32 %v1261_v8, %v1267_v26 }
 0x594   : > { %v1272_v28 = vmul.f32 1.442695, %v1269_v27 }
 0x595   : > { %v1540_v29 = vpop.permute.xlu0 %1539 }
 0x596   : > { %3553 = vpow2.f32 %v1272_v28  ;;  %3214 = vmatprep.subr.msk.mxu1 %vm964_vm1, %v1540_v29 }
 0x5a3   : > { %v3554_v30 = vpop.eup %3553 }
 0x5a4   : > { %v1277_v32 = vsel %vm1054_vm2, %v3554_v30, 0.0 }
 0x5a5   : > { %1278 = vadd.xlane.f32.xlu1 %v1277_v32 }
 0x5b6   : > { %1535 = vrot.lane.b32.xlu1 %v4462_v34, %s4090_s0 }
 0x5ba   : > { %1827 = vrot.lane.b32.xlu1 %v4465_v35, %s4091_s26  ;;  %s4779_s26 = sld [smem:[#allocation48_spill]] }
 0x5be   : > { %1825 = vrot.lane.b32.xlu1 %v4462_v34, %s4092_s19 }
 0x5c0   : > { %s4660_s19 = scalar_lea.hbm %s4779_s26, %s3070_s30 }
 0x5c6   : > { %v1276_v37 = vpop.xlane.xlu0 %1275 }
 0x5c7   : > { %3555 = vrcp.f32 %v1276_v37 }
 0x5ca   : > { %v1534_v44 = vpop.permute.xlu0 %1533 }
 0x5ce   : > { %v1830_v48 = vpop.permute.xlu0 %1829 }
 0x5d2   : > { %v1824_v63 = vpop.permute.xlu0 %1823 }
 0x5d4   : > { %v3556_v38 = vpop.eup %3555 }
 0x5d5   : > { %v1282_v39 = vmul.f32 %v3556_v38, %v3548_v15 }
 0x5d7   : > { %3201 = vmatprep.mubr.msk.f32.mxu0 %vm1054_vm2, %v1282_v39 }
 0x62e   : > { %v3189_v41 = vpop.f32.mrf.mxu0  ;;  %v1279_v42 = vpop.xlane.xlu1 %1278 }
 0x62f   : > { %3557 = vrcp.f32 %v1279_v42 }
 0x630   : > { %v1155_v43 = vpop.f32.mrf.mxu0 }
 0x631   : > { %3211 = vmatprep.mubr.msk.f32.mxu1 %vm964_vm1, %v1155_v43 }
 0x632   : > { %3212 = vmatmul.mubr.msk.f32.vlgmr.msra.gmra.mxu1 %vm964_vm1, %v3189_v41  ;;  %v1536_v45 = vpop.permute.xlu1 %1535 }
 0x633   : > { %3215 = vmatpush3.xpose.msk.msra.mxu1 %vm964_vm1, %v1540_v29  ;;  %3218 = vmatprep.mubr.msk.f32.mxu1 %vm964_vm1, %v1534_v44 }
 0x634   : > { %3216 = vmatprep.subr.msk.mxu1 %vm964_vm1, %v1538_v40 }
 0x636   : > { %v1828_v2 = vpop.permute.xlu1 %1827 }
 0x637   : > { %3217 = vmatpush3.xpose.msk.msra.mxu1 %vm964_vm1, %v1538_v40 }
 0x63a   : > { %3219 = vmatmul.mubr.msk.f32.vlgmr.msra.gmra.mxu1 %vm964_vm1, %v1536_v45  ;;  %v1826_v3 = vpop.permute.xlu1 %1825 }
 0x63c   : > { %v3558_v46 = vpop.eup %3557 }
 0x63d   : > { %v1283_v47 = vmul.f32 %v3558_v46, %v3554_v30  ;;  %v956_v46 = vld [vmem:[#allocation10 + $0x10] sm:$0xff] }
 0x63f   : > { %3202 = vmatmul.mubr.msk.f32.vlgmr.msra.gmra.mxu0 %vm1054_vm2, %v1283_v47  ;;  %v2122_v47 = vld [vmem:[#allocation2] sm:$0xff] }
 0x640   : > { %3205 = vmatpush3.msra.mxu0 %v955_v36 }
 0x641   : > { %3233 = vmatprep.subr.msk.mxu0 %vm964_vm1, %v1830_v48 }
 0x6f2   : > { %v4535_v49 = vpop.f32.mrf.mxu1 }
 0x6f4   : > { %v4537_v50 = vpop.f32.mrf.mxu1 }
 0x6fa   : > { %v3220_v51 = vpop.f32.mrf.mxu1 }
 0x6fb   : > { %v1625_v53 = vmul.f32 0.35355338, %v3220_v51 }
 0x6fc   : > { %v1615_v54 = vpop.f32.mrf.mxu1 }
 0x6fd   : > { %v1624_v56 = vmul.f32 0.35355338, %v1615_v54  ;;  %v1630_v57 = vadd.f32 %v3031_v52, %v1625_v53 }
 0x6ff   : > { %v3203_v58 = vpop.f32.mrf.mxu0  ;;  %v1634_v59 = vsel %vm1054_vm2, %v1630_v57, -inf  ;;  %v1629_v60 = vadd.f32 %v3030_v55, %v1624_v56 }
 0x700   : > { %1635 = vmax.xlane.f32.xlu1 %v1634_v59  ;;  %v957_v59 = vld [vmem:[#allocation10 + $0x18] sm:$0xff] }
 0x701   : > { %v1362_v61 = vpop.f32.mrf.mxu0  ;;  %v1631_v62 = vsel %vm1054_vm2, %v1629_v60, -inf }
 0x702   : > { %1632 = vmax.xlane.f32.xlu0 %v1631_v62  ;;  %3206 = vmatprep.mubr.msk.f32.mxu0 %vm964_vm1, %v1362_v61 }
 0x703   : > { %3207 = vmatmul.mubr.msk.f32.vlgmr.msra.gmra.mxu0 %vm964_vm1, %v3203_v58 }
 0x704   : > { %3234 = vmatpush3.xpose.msk.msra.mxu0 %vm964_vm1, %v1830_v48  ;;  %3237 = vmatprep.mubr.msk.f32.mxu0 %vm964_vm1, %v1824_v63  ;;  %v2123_v48 = vld [vmem:[#allocation2 + $0x8] sm:$0xff] }
 0x705   : > { %3235 = vmatprep.subr.msk.mxu0 %vm964_vm1, %v1828_v2 }
 0x708   : > { %3236 = vmatpush3.xpose.msk.msra.mxu0 %vm964_vm1, %v1828_v2 }
 0x709   : > { %3252 = vmatprep.subr.mxu0 %v4458_v33 }
 0x70b   : > { %3238 = vmatmul.mubr.msk.f32.vlgmr.msra.gmra.mxu0 %vm964_vm1, %v1826_v3 }
 0x70c   : > { %3253 = vmatpush3.msra.mxu0 %v4458_v33  ;;  %3256 = vmatprep.mubr.msk.f32.mxu0 %vm1054_vm2, %v2122_v47 }
 0x70d   : > { %3254 = vmatprep.subr.mxu0 %v4454_v31 }
 0x70e   : > { %3255 = vmatpush3.msra.mxu0 %v4454_v31 }
 0x70f   : > { %3257 = vmatmul.mubr.msk.f32.vlgmr.msra.gmra.mxu0 %vm1054_vm2, %v2123_v48 }
 0x711   : > { %1653 = vrot.lane.b32.xlu1 %v4465_v35, %s4093_s20 }
 0x789   : > { %v1636_v4 = vpop.xlane.xlu1 %1635 }
 0x78a   : > { %v1638_v5 = vsub.f32 %v1630_v57, %v1636_v4 }
 0x78b   : > { %v1633_v6 = vpop.xlane.xlu0 %1632 }
 0x78c   : > { %v1641_v7 = vmul.f32 1.442695, %v1638_v5  ;;  %v1637_v8 = vsub.f32 %v1629_v60, %v1633_v6  ;;  %v2208_v60 = vld [vmem:[#allocation13 + $0x18] sm:$0xff] }
 0x78d   : > { %v1654_v27 = vpop.permute.xlu1 %1653 }
 0x78e   : > { %3559 = vpow2.f32 %v1641_v7  ;;  %v1639_v9 = vmul.f32 1.442695, %v1637_v8 }
 0x790   : > { %3561 = vpow2.f32 %v1639_v9  ;;  %v2207_v9 = vld [vmem:[#allocation13 + $0x10] sm:$0xff] }
 0x79b   : > { %v3560_v10 = vpop.eup %3559 }
 0x79c   : > { %v1646_v33 = vsel %vm1054_vm2, %v3560_v10, 0.0 }
 0x79d   : > { %v3562_v11 = vpop.eup %3561  ;;  %1647 = vadd.xlane.f32.xlu0 %v1646_v33 }
 0x79e   : > { %v1643_v31 = vsel %vm1054_vm2, %v3562_v11, 0.0 }
 0x7a1   : > { %1644 = vadd.xlane.f32.xlu0 %v1643_v31 }
 0x7b7   : > { %1655 = vrot.lane.b32.xlu0 %v4462_v34, %s4093_s20  ;;  %s3973_s20 = scalar_lea.vmem %s4662_s3, 256 }
 0x7b8   : > { %p3974_p0 = scmp.ne.s32.totalorder %s4662_s3, %s3973_s20 }
 0x7ba   : > { %p3975_p12 = pnand %p3974_p0, %p4780_p2 }
 0x7bc   : > { %p3976_p10 = pneg %p3975_p12 }
 0x7c3   : > { %v4558_v12 = vpop.f32.mrf.mxu0 }
 0x7c4   : > { %v1530_v61 = vadd.f32 %v4535_v49, %v4558_v12  ;;  %v2205_v49 = vld [vmem:[#allocation13] sm:$0xff]  ;;  %v3046_v12 = vld [vmem:[#allocation11] ss:$0 sm:$0xff] }
 0x7c5   : > { %v4560_v13 = vpop.f32.mrf.mxu0 }
 0x7c6   : > { %v1525_v63 = vadd.f32 %v4537_v50, %v4560_v13  ;;  %v2299_v50 = vld [vmem:[#allocation5] sm:$0xff]  ;;  %v3049_v13 = vld [vmem:[#allocation14] ss:$0 sm:$0xff] }
 0x7c7   : > { %3274 = vmatprep.mubr.msk.f32.mxu0 %vm1054_vm2, %v2299_v50  ;;  %v2642_v50 = vld [vmem:[%s4724_s17 + $0x60] sm:$0xff] }
 0x7cb   : > { %v3239_v14 = vpop.f32.mrf.mxu0 }
 0x7cc   : > { %v1915_v15 = vmul.f32 0.35355338, %v3239_v14 }
 0x7cd   : > { %v1905_v16 = vpop.f32.mrf.mxu0 }
 0x7ce   : > { %v1914_v18 = vmul.f32 0.35355338, %v1905_v16  ;;  %v1920_v21 = vadd.f32 %v3041_v19, %v1915_v15 }
 0x7cf   : > { %v3258_v5 = vpop.f32.mrf.mxu0 }
 0x7d0   : > { %v1919_v20 = vadd.f32 %v3040_v17, %v1914_v18  ;;  %v1924_v23 = vsel %vm1054_vm2, %v1920_v21, -inf }
 0x7d1   : > { %v2196_v8 = vpop.f32.mrf.mxu0 }
 0x7d2   : > { %v1921_v22 = vsel %vm1054_vm2, %v1919_v20, -inf }
 0x7d3   : > { %1922 = vmax.xlane.f32.xlu1 %v1921_v22 }
 0x7d6   : > { %1925 = vmax.xlane.f32.xlu0 %v1924_v23  ;;  %v2300_v23 = vld [vmem:[#allocation5 + $0x8] sm:$0xff] }
 0x826   : > { %v1648_v24 = vpop.xlane.xlu0 %1647 }
 0x827   : > { %3563 = vrcp.f32 %v1648_v24  ;;  %v2385_v24 = vld [vmem:[#allocation16 + $0x18] sm:$0xff] }
 0x82a   : > { %v1645_v25 = vpop.xlane.xlu0 %1644 }
 0x82b   : > { %3565 = vrcp.f32 %v1645_v25  ;;  %v2384_v25 = vld [vmem:[#allocation16 + $0x10] sm:$0xff] }
 0x82e   : > { %v1656_v26 = vpop.permute.xlu0 %1655 }
 0x82f   : > { %3221 = vmatprep.subr.mxu1 %v1656_v26 }
 0x830   : > { %3222 = vmatpush3.msra.mxu1 %v1656_v26  ;;  %v2383_v26 = vld [vmem:[#allocation16 + $0x8] sm:$0xff] }
 0x831   : > { %3223 = vmatprep.subr.mxu1 %v1654_v27 }
 0x832   : > { %3224 = vmatpush3.msra.mxu1 %v1654_v27  ;;  %v2382_v27 = vld [vmem:[#allocation16] sm:$0xff] }
 0x833   : > { %3228 = vmatprep.subr.mxu1 %v956_v46 }
 0x834   : > { %v3564_v28 = vpop.eup %3563 }
 0x835   : > { %v1652_v32 = vmul.f32 %v3564_v28, %v3560_v10  ;;  %v2206_v10 = vld [vmem:[#allocation13 + $0x8] sm:$0xff] }
 0x838   : > { %v3566_v29 = vpop.eup %3565 }
 0x839   : > { %v1651_v30 = vmul.f32 %v3566_v29, %v3562_v11 }
 0x83b   : > { %3225 = vmatprep.mubr.msk.f32.mxu1 %vm1054_vm2, %v1651_v30  ;;  %v3054_v30 = vld [vmem:[#allocation17] ss:$0 sm:$0xff] }
 0x83c   : > { %3226 = vmatmul.mubr.msk.f32.vlgmr.msra.gmra.mxu1 %vm1054_vm2, %v1652_v32 }
 0x83d   : > { %3229 = vmatpush3.msra.mxu1 %v956_v46 }
 0x85c   : > { %v1923_v36 = vpop.xlane.xlu1 %1922 }
 0x85d   : > { %v1927_v37 = vsub.f32 %v1919_v20, %v1923_v36 }
 0x85f   : > { %v1929_v38 = vmul.f32 1.442695, %v1927_v37  ;;  %v1926_v39 = vpop.xlane.xlu0 %1925 }
 0x860   : > { %v1928_v40 = vsub.f32 %v1920_v21, %v1926_v39 }
 0x861   : > { %3567 = vpow2.f32 %v1929_v38 }
 0x862   : > { %v1931_v41 = vmul.f32 1.442695, %v1928_v40 }
 0x864   : > { %3569 = vpow2.f32 %v1931_v41 }
 0x86e   : > { %v3568_v42 = vpop.eup %3567 }
 0x86f   : > { %v1933_v43 = vsel %vm1054_vm2, %v3568_v42, 0.0 }
 0x870   : > { %1934 = vadd.xlane.f32.xlu0 %v1933_v43 }
 0x871   : > { %v3570_v44 = vpop.eup %3569 }
 0x872   : > { %v1936_v45 = vsel %vm1054_vm2, %v3570_v44, 0.0 }
 0x873   : > { %1937 = vadd.xlane.f32.xlu1 %v1936_v45 }
 0x884   : > { %1943 = vrot.lane.b32.xlu1 %v4465_v35, %s4094_s23 }
 0x886   : > { %1945 = vrot.lane.b32.xlu0 %v4462_v34, %s4094_s23  ;;  %s4095_s23 = smov [#allocation26]  }
 0x887   : > { %s3977_s27 = sshll.u32 %s4095_s23, 4  ;;  %s3978_s27 = int_to_ptr.vmem [resolvable:$false] %s3977_s27 }
 0x888   : > { %s3979_s22 = scalar_lea.vmem %s3978_s27, 512  ;;  %p3980_p9 = scmp.lt.s32.totalorder %s4662_s3, %s3978_s27 }
 0x889   : > { %p3981_p1 = scmp.lt.s32.totalorder %s3979_s22, %s3973_s20 }
 0x88b   : > { %p3982_p5 = por %p3981_p1, %p3980_p9 }
 0x88d   : > { %p3983_p3 = pnand %p3982_p5, %p3976_p10 }
 0x8f9   : > { %v1935_v51 = vpop.xlane.xlu0 %1934 }
 0x8fa   : > { %3571 = vrcp.f32 %v1935_v51 }
 0x8fc   : > { %v3227_v52 = vpop.f32.mrf.mxu1  ;;  %v1938_v53 = vpop.xlane.xlu1 %1937 }
 0x8fd   : > { %3573 = vrcp.f32 %v1938_v53  ;;  %v1946_v54 = vpop.permute.xlu0 %1945  ;;  %v2523_v53 = vld [vmem:[#allocation22 + $0x18] sm:$0xff] }
 0x8fe   : > { %v1731_v55 = vpop.f32.mrf.mxu1  ;;  %3240 = vmatprep.subr.mxu1 %v1946_v54 }
 0x8ff   : > { %3230 = vmatprep.mubr.msk.f32.mxu1 %vm964_vm1, %v1731_v55  ;;  %v2521_v55 = vld [vmem:[#allocation22 + $0x8] sm:$0xff] }
 0x900   : > { %3231 = vmatmul.mubr.msk.f32.vlgmr.msra.gmra.mxu1 %vm964_vm1, %v3227_v52  ;;  %v1944_v35 = vpop.permute.xlu1 %1943 }
 0x901   : > { %3241 = vmatpush3.msra.mxu1 %v1946_v54  ;;  %v2522_v54 = vld [vmem:[#allocation22 + $0x10] sm:$0xff] }
 0x902   : > { %3242 = vmatprep.subr.mxu1 %v1944_v35 }
 0x903   : > { %3243 = vmatpush3.msra.mxu1 %v1944_v35  ;;  %v2520_v35 = vld [vmem:[#allocation22] sm:$0xff] }
 0x904   : > { %3247 = vmatprep.subr.mxu1 %v957_v59 }
 0x907   : > { %v3572_v34 = vpop.eup %3571 }
 0x908   : > { %v1941_v56 = vmul.f32 %v3572_v34, %v3568_v42 }
 0x90a   : > { %v3574_v57 = vpop.eup %3573  ;;  %3244 = vmatprep.mubr.msk.f32.mxu1 %vm1054_vm2, %v1941_v56 }
 0x90b   : > { %v1942_v58 = vmul.f32 %v3574_v57, %v3570_v44 }
 0x90d   : > { %3245 = vmatmul.mubr.msk.f32.vlgmr.msra.gmra.mxu1 %vm1054_vm2, %v1942_v58 }
 0x90e   : > { %3248 = vmatpush3.msra.mxu1 %v957_v59 }
 0x90f   : > { %3259 = vmatprep.subr.mxu1 %v2208_v60 }
 0x9c0   : > { %v3232_v62 = vpop.f32.mrf.mxu1 }
 0x9c1   : > { %v1822_v2 = vadd.f32 %v3232_v62, %v1530_v61  ;;  %v3057_v62 = vld [vmem:[#allocation19] ss:$0 sm:$0xff] }
 0x9c2   : > { %v1812_v3 = vpop.f32.mrf.mxu1 }
 0x9c3   : > { %v1821_v4 = vadd.f32 %v1812_v3, %v1525_v63 }
 0x9cd   : > { %v3246_v6 = vpop.f32.mrf.mxu1 }
 0x9cf   : > { %v2021_v7 = vpop.f32.mrf.mxu1 }
 0x9d0   : > { %3249 = vmatprep.mubr.msk.f32.mxu1 %vm964_vm1, %v2021_v7 }
 0x9d1   : > { %3250 = vmatmul.mubr.msk.f32.vlgmr.msra.gmra.mxu1 %vm964_vm1, %v3246_v6 }
 0x9d2   : > { %3260 = vmatpush3.msra.mxu1 %v2208_v60  ;;  %3267 = vmatprep.mubr.msk.f32.mxu1 %vm825_vm0, %v2196_v8 }
 0x9d3   : > { %3261 = vmatprep.subr.mxu1 %v2207_v9 }
 0x9d4   : > { %3262 = vmatpush3.msra.mxu1 %v2207_v9  ;;  %v2645_v9 = vld [vmem:[%s4724_s17 + $0x78] sm:$0xff] }
 0x9d5   : > { %3263 = vmatprep.subr.mxu1 %v2206_v10 }
 0x9d6   : > { %3264 = vmatpush3.msra.mxu1 %v2206_v10  ;;  %v2644_v10 = vld [vmem:[%s4724_s17 + $0x70] sm:$0xff] }
 0x9d7   : > { %3265 = vmatprep.subr.mxu1 %v2205_v49 }
 0x9d8   : > { %3266 = vmatpush3.msra.mxu1 %v2205_v49  ;;  %v2643_v49 = vld [vmem:[%s4724_s17 + $0x68] sm:$0xff] }
 0x9d9   : > { %3268 = vmatmul.mubr.msk.f32.vlgmr.msra.gmra.mxu1 %vm825_vm0, %v3258_v5  ;;  %3288 = vmatprep.subr.mxu1 %v2523_v53  ;;  %v3058_v5 = vld [vmem:[#allocation20] ss:$0 sm:$0xff] }
 0x9da   : > { %3289 = vmatpush3.msra.mxu1 %v2523_v53 }
 0x9db   : > { %3290 = vmatprep.subr.mxu1 %v2522_v54 }
 0x9dc   : > { %3291 = vmatpush3.msra.mxu1 %v2522_v54 }
 0x9dd   : > { %3292 = vmatprep.subr.mxu1 %v2521_v55 }
 0x9de   : > { %3293 = vmatpush3.msra.mxu1 %v2521_v55 }
 0x9df   : > { %3294 = vmatprep.subr.mxu1 %v2520_v35 }
 0x9e0   : > { %3295 = vmatpush3.msra.mxu1 %v2520_v35 }
 0xa91   : > { %v3251_v33 = vpop.f32.mrf.mxu1 }
 0xa92   : > { %v2112_v31 = vadd.f32 %v3251_v33, %v1822_v2  ;;  %v2641_v33 = vld [vmem:[%s4724_s17 + $0x58] sm:$0xff] }
 0xa93   : > { %v2102_v11 = vpop.f32.mrf.mxu1 }
 0xa94   : > { %v2111_v14 = vadd.f32 %v2102_v11, %v1821_v4  ;;  %v2121_v16 = vadd.f32 %v3046_v12, %v2112_v31  ;;  %v2640_v11 = vld [vmem:[%s4724_s17 + $0x50] sm:$0xff]  ;;  %v2639_v31 = vld [vmem:[%s4724_s17 + $0x48] sm:$0xff] }
 0xa96   : > { %v2120_v19 = vadd.f32 %v3046_v12, %v2111_v14  ;;  %v2638_v12 = vld [vmem:[%s4724_s17 + $0x40] sm:$0xff]  ;;  %v2636_v14 = vld [vmem:[%s4724_s17 + $0x30] sm:$0xff] }
 0xa99   : > { %v3269_v15 = vpop.f32.mrf.mxu1 }
 0xa9a   : > { %v2294_v17 = vadd.f32 %v3269_v15, %v3049_v13  ;;  %v2635_v15 = vld [vmem:[%s4724_s17 + $0x28] sm:$0xff] }
 0xa9b   : > { %v2288_v18 = vpop.f32.mrf.mxu1 }
 0xa9c   : > { %v2298_v20 = vadd.f32 %v2294_v17, %v2121_v16  ;;  %v2289_v21 = vadd.f32 %v3049_v13, %v2288_v18  ;;  %v2637_v13 = vld [vmem:[%s4724_s17 + $0x38] sm:$0xff]  ;;  %v2634_v16 = vld [vmem:[%s4724_s17 + $0x20] sm:$0xff]  ;;  %v2632_v18 = vld [vmem:[%s4724_s17 + $0x10] sm:$0xff] }
 0xa9d   : > { %v2633_v17 = vld [vmem:[%s4724_s17 + $0x18] sm:$0xff] }
 0xa9e   : > { %v2297_v22 = vadd.f32 %v2289_v21, %v2120_v19  ;;  %3270 = vmatprep.subr.mxu0 %v2298_v20  ;;  %v2631_v19 = vld [vmem:[%s4724_s17 + $0x8] sm:$0xff] }
 0xa9f   : > { %3271 = vmatpush3.msra.mxu0 %v2298_v20  ;;  %v2630_v20 = vld [vmem:[%s4724_s17] sm:$0xff]  ;;  %v3059_v21 = vld [vmem:[#allocation23] ss:$0 sm:$0xff] }
 0xaa0   : > { %3272 = vmatprep.subr.mxu0 %v2297_v22 }
 0xaa1   : > { %3273 = vmatpush3.msra.mxu0 %v2297_v22 }
 0xaa2   : > { %3275 = vmatmul.mubr.msk.f32.vlgmr.msra.gmra.mxu0 %vm1054_vm2, %v2300_v23  ;;  %3277 = vmatprep.subr.mxu0 %v2385_v24 }
 0xaa3   : > { %3278 = vmatpush3.msra.mxu0 %v2385_v24 }
 0xaa4   : > { %3279 = vmatprep.subr.mxu0 %v2384_v25 }
 0xaa5   : > { %3280 = vmatpush3.msra.mxu0 %v2384_v25 }
 0xaa6   : > { %3281 = vmatprep.subr.mxu0 %v2383_v26 }
 0xaa7   : > { %3282 = vmatpush3.msra.mxu0 %v2383_v26 }
 0xaa8   : > { %3283 = vmatprep.subr.mxu0 %v2382_v27 }
 0xaa9   : > { %3284 = vmatpush3.msra.mxu0 %v2382_v27 }
 0xaaa   : > { %3299 = vmatprep.subr.mxu0 %v2645_v9 }
 0xb62   : > { %v3276_v28 = vpop.f32.mrf.mxu0 }
 0xb64   : > { %v2373_v29 = vpop.f32.mrf.mxu0 }
 0xb65   : > { %3285 = vmatprep.mubr.msk.f32.mxu0 %vm825_vm0, %v2373_v29 }
 0xb66   : > { %3286 = vmatmul.mubr.msk.f32.vlgmr.msra.gmra.mxu0 %vm825_vm0, %v3276_v28 }
 0xb67   : > { %3300 = vmatpush3.msra.mxu0 %v2645_v9 }
 0xb68   : > { %3301 = vmatprep.subr.mxu0 %v2644_v10 }
 0xb69   : > { %3302 = vmatpush3.msra.mxu0 %v2644_v10 }
 0xb6a   : > { %3303 = vmatprep.subr.mxu0 %v2643_v49 }
 0xb6b   : > { %3304 = vmatpush3.msra.mxu0 %v2643_v49 }
 0xb6c   : > { %3305 = vmatprep.subr.mxu0 %v2642_v50 }
 0xb6d   : > { %3306 = vmatpush3.msra.mxu0 %v2642_v50 }
 0xb6e   : > { %3307 = vmatprep.subr.mxu0 %v2641_v33 }
 0xb6f   : > { %3308 = vmatpush3.msra.mxu0 %v2641_v33 }
 0xb70   : > { %3309 = vmatprep.subr.mxu0 %v2640_v11 }
 0xb71   : > { %3310 = vmatpush3.msra.mxu0 %v2640_v11 }
 0xb72   : > { %3311 = vmatprep.subr.mxu0 %v2639_v31 }
 0xb73   : > { %3312 = vmatpush3.msra.mxu0 %v2639_v31 }
 0xb74   : > { %3313 = vmatprep.subr.mxu0 %v2638_v12 }
 0xb75   : > { %3314 = vmatpush3.msra.mxu0 %v2638_v12 }
 0xb76   : > { %3315 = vmatprep.subr.mxu0 %v2637_v13 }
 0xb77   : > { %3316 = vmatpush3.msra.mxu0 %v2637_v13 }
 0xb78   : > { %3317 = vmatprep.subr.mxu0 %v2636_v14 }
 0xb79   : > { %3318 = vmatpush3.msra.mxu0 %v2636_v14 }
 0xb7a   : > { %3319 = vmatprep.subr.mxu0 %v2635_v15 }
 0xb7b   : > { %3320 = vmatpush3.msra.mxu0 %v2635_v15 }
 0xb7c   : > { %3321 = vmatprep.subr.mxu0 %v2634_v16 }
 0xb7d   : > { %3322 = vmatpush3.msra.mxu0 %v2634_v16 }
 0xb7e   : > { %3323 = vmatprep.subr.mxu0 %v2633_v17 }
 0xb7f   : > { %3324 = vmatpush3.msra.mxu0 %v2633_v17 }
 0xb80   : > { %3325 = vmatprep.subr.mxu0 %v2632_v18 }
 0xb81   : > { %3326 = vmatpush3.msra.mxu0 %v2632_v18 }
 0xb82   : > { %3327 = vmatprep.subr.mxu0 %v2631_v19 }
 0xb83   : > { %3328 = vmatpush3.msra.mxu0 %v2631_v19 }
 0xb84   : > { %3329 = vmatprep.subr.mxu0 %v2630_v20 }
 0xb85   : > { %3330 = vmatpush3.msra.mxu0 %v2630_v20 }
 0xc26   : > { %v3287_v32 = vpop.f32.mrf.mxu0 }
 0xc27   : > { %v2471_v36 = vadd.f32 %v3287_v32, %v3054_v30 }
 0xc28   : > { %v2465_v37 = vpop.f32.mrf.mxu0 }
 0xc29   : > { %v4591_v38 = vadd.f32 %v2471_v36, %v4432_v1  ;;  %v2466_v39 = vadd.f32 %v3054_v30, %v2465_v37 }
 0xc2b   : > { %v4594_v40 = vadd.f32 %v2466_v39, %v4430_v0  ;;  %v2481_v41 = vsel %vm825_vm0, %v4591_v38, 0.0 }
 0xc2c   : > { %2482 = vadd.xlane.f32.xlu0 %v2481_v41 }
 0xc2d   : > { %v2478_v42 = vsel %vm825_vm0, %v4594_v40, 0.0 }
 0xc2e   : > { %2479 = vadd.xlane.f32.xlu1 %v2478_v42 }
 0xcb5   : > { %v2483_v43 = vpop.xlane.xlu0 %2482 }
 0xcb6   : > { %v2485_v44 = vmul.f32 0.03125, %v2483_v43 }
 0xcb7   : > { %v2480_v45 = vpop.xlane.xlu1 %2479 }
 0xcb8   : > { %v2487_v46 = vsub.f32 %v4591_v38, %v2485_v44  ;;  %v2484_v47 = vmul.f32 0.03125, %v2480_v45 }
 0xcba   : > { %v2486_v1 = vsub.f32 %v4594_v40, %v2484_v47  ;;  %v2489_v48 = vmul.f32 %v2487_v46, %v2487_v46 }
 0xcbc   : > { %v2493_v0 = vsel %vm825_vm0, %v2489_v48, 0.0  ;;  %v2488_v51 = vmul.f32 %v2486_v1, %v2486_v1 }
 0xcbd   : > { %2494 = vadd.xlane.f32.xlu1 %v2493_v0  ;;  %v3062_v0 = vld [vmem:[#allocation25] ss:$0 sm:$0xff] }
 0xcbe   : > { %v2490_v52 = vsel %vm825_vm0, %v2488_v51, 0.0 }
 0xcbf   : > { %2491 = vadd.xlane.f32.xlu0 %v2490_v52 }
 0xd46   : > { %v2495_v34 = vpop.xlane.xlu1 %2494 }
 0xd47   : > { %v2497_v56 = vmul.f32 0.03125, %v2495_v34 }
 0xd48   : > { %v2492_v57 = vpop.xlane.xlu0 %2491 }
 0xd49   : > { %v2499_v58 = vadd.f32 1e-05, %v2497_v56  ;;  %v2496_v59 = vmul.f32 0.03125, %v2492_v57 }
 0xd4b   : > { %3575 = vrsqrt.f32 %v2499_v58  ;;  %v2498_v60 = vadd.f32 1e-05, %v2496_v59 }
 0xd4d   : > { %3577 = vrsqrt.f32 %v2498_v60 }
 0xd58   : > { %v3576_v61 = vpop.eup %3575 }
 0xd59   : > { %v2503_v63 = vmul.f32 %v3576_v61, %v2487_v46 }
 0xd5a   : > { %v3578_v2 = vpop.eup %3577 }
 0xd5b   : > { %v2502_v3 = vmul.f32 %v3578_v2, %v2486_v1  ;;  %v2511_v4 = vmul.f32 %v3057_v62, %v2503_v63 }
 0xd5d   : > { %v2510_v6 = vmul.f32 %v3057_v62, %v2502_v3  ;;  %v2519_v8 = vadd.f32 %v3058_v5, %v2511_v4 }
 0xd5f   : > { %v2518_v7 = vadd.f32 %v3058_v5, %v2510_v6 }
 0xd61   : > { %3296 = vmatprep.mubr.msk.f32.mxu1 %vm825_vm0, %v2518_v7 }
 0xd62   : > { %3297 = vmatmul.mubr.msk.f32.vlgmr.msra.gmra.mxu1 %vm825_vm0, %v2519_v8 }
 0xe22   : > { %v3298_v22 = vpop.f32.mrf.mxu1 }
 0xe23   : > { %v2609_v23 = vadd.f32 %v3298_v22, %v3059_v21 }
 0xe24   : > { %v2603_v24 = vpop.f32.mrf.mxu1 }
 0xe25   : > { %v2613_v25 = vmul.f32 %v2609_v23, %v2609_v23  ;;  %v2604_v26 = vadd.f32 %v3059_v21, %v2603_v24 }
 0xe27   : > { %v2615_v27 = vmul.f32 %v2613_v25, %v2609_v23  ;;  %v2612_v28 = vmul.f32 %v2604_v26, %v2604_v26 }
 0xe29   : > { %v2617_v29 = vmul.f32 0.044715, %v2615_v27  ;;  %v2614_v30 = vmul.f32 %v2612_v28, %v2604_v26 }
 0xe2b   : > { %v2619_v32 = vadd.f32 %v2617_v29, %v2609_v23  ;;  %v2616_v36 = vmul.f32 0.044715, %v2614_v30 }
 0xe2d   : > { %v2621_v37 = vmul.f32 0.7978846, %v2619_v32  ;;  %v2618_v39 = vadd.f32 %v2616_v36, %v2604_v26 }
 0xe2f   : > { %3579 = vtanh.f32 %v2621_v37  ;;  %v2620_v41 = vmul.f32 0.7978846, %v2618_v39 }
 0xe31   : > { %3581 = vtanh.f32 %v2620_v41 }
 0xe3c   : > { %v3580_v42 = vpop.eup %3579 }
 0xe3d   : > { %v2625_v43 = vadd.f32 1.0, %v3580_v42 }
 0xe3e   : > { %v3582_v44 = vpop.eup %3581 }
 0xe3f   : > { %v2624_v45 = vadd.f32 1.0, %v3582_v44  ;;  %v2627_v46 = vmul.f32 0.5, %v2625_v43 }
 0xe41   : > { %v2626_v47 = vmul.f32 0.5, %v2624_v45  ;;  %v2629_v48 = vmul.f32 %v2627_v46, %v2609_v23 }
 0xe43   : > { %v2628_v1 = vmul.f32 %v2626_v47, %v2604_v26 }
 0xe45   : > { %3331 = vmatprep.mubr.f32.mxu0 %v2628_v1 }
 0xe46   : > { %3332 = vmatmul.mubr.f32.vlgmr.msra.gmra.mxu0 %v2629_v48 }
 0xf06   : > { %v3333_v51 = vpop.f32.mrf.mxu0 }
 0xf07   : > { %v2725_v52 = vadd.f32 %v3333_v51, %v3062_v0 }
 0xf08   : > { %v2719_v53 = vpop.f32.mrf.mxu0 }
 0xf09   : > { %v2729_v54 = vadd.f32 %v2725_v52, %v4591_v38  ;;  %v2720_v55 = vadd.f32 %v3062_v0, %v2719_v53 }
 0xf0b   : > { %2731 = vst.msk [vmem:[%s810_s2 + $0x8] sm:$0xff] %vm825_vm0, %v2729_v54  ;;  %v2728_v35 = vadd.f32 %v2720_v55, %v4594_v40 }
 0xf0d   : > { %2730 = vst.msk [vmem:[%s810_s2] sm:$0xff] %vm825_vm0, %v2728_v35 }
 0xf0e   : > { %3986 = shalt.err (!%p3983_p3)
}
 0xf0f   : > { %s3987_s28 = scalar_lea.hbm %s4660_s19, 256  ;;  %s3991_s30 = scalar_lea.hbm %s4779_s26, 512 }
 0xf10   : > { %p3988_p6 = scmp.ne.s32.totalorder %s4660_s19, %s3987_s28  ;;  %p3992_p8 = scmp.lt.s32.totalorder %s4660_s19, %s4779_s26 }
 0xf11   : > { %p3993_p13 = scmp.lt.s32.totalorder %s3991_s30, %s3987_s28 }
 0xf12   : > { %p3989_p7 = pnand %p3988_p6, %p4780_p2 }
 0xf13   : > { %p3994_p11 = por %p3993_p13, %p3992_p8 }
 0xf14   : > { %p3990_p4 = pneg %p3989_p7 }
 0xf16   : > { %p3995_p0 = pnand %p3994_p11, %p3990_p4 }
 0xf18   : > { %3998 = shalt.err (!%p3995_p0)
}
 0xf19   : > { %s4096_s0 = smov 128   ;;  %s4097_s20 = smov 8  }
 0xf1a   : > { %3394 = dma.vmem_to_hbm [thread:$0]  (%p4780_p2), %s4662_s3, 256, %s4660_s19, %s4667_s1, %s4096_s0, %s4096_s0, %s4097_s20  }
 0xf1b PF: > { %s4781_s23 = sld [smem:[#allocation39_spill]] }
 0xf1c   : > { %s4782_s27 = sld [smem:[#allocation36_spill]] }
 0xf1d   : > { %s4783_s22 = sld [smem:[#allocation43_spill]] }
 0xf21   : > { %p3476_p12 = scmp.ge.s32.totalorder %s4781_s23, 2 }
 0xf22   : > { %s2761_s25 = sand.u32 1, %s4782_s27  }
 0xf23   : > { %p4784_p10 = scmp.ne.s32.totalorder %s4783_s22, 0  ;;  %s2762_s28 = scalar_lea.sflag [#allocation4], %s2761_s25 }
 0xf25   : > { %p3443_p9 = pnand %p3476_p12, %p4784_p10 }
 0xf27   : > { %p3444_p1 = pneg %p3443_p9 }
 0xf29   : > { %4048 = dma.done.wait (%p3444_p1), %s2762_s28, 256  }
 0xf2a   : > { %4050 = vsyncadd (%p3444_p1), %s2762_s28, 4294967040  ;;  %s4785_s21 = sld [smem:[#allocation40_spill]] }
 0xf2b   : > { %s4786_s0 = sld [smem:[#allocation37_spill]] }
 0xf2c   : > { %s4787_s30 = sld [smem:[#allocation38_spill]] }
 0xf2d   : > { %s4788_s20 = sld [smem:[#allocation41_spill]] }
 0xf30   : > { %p37_p5 = scmp.ge.s32.totalorder %s4785_s21, 4  }
 0xf32   :  { %39 = sbr.rel (!%p37_p5) target bundleno = 17 (0x11), region = 198 }
 0xf37   :  { %2767 = vsyncpa [#allocation3], 1 }
 0xf38   :  { %2769 = vsyncpa [#allocation3 + $0x1], 1 }
 0xf39   :  { %2770 = vsyncpa [#allocation6], 1 }
 0xf3a   :  { %2771 = vsyncpa [#allocation9], 1 }
 0xf3b   :  { %2772 = vsyncpa [#allocation12], 1 }
 0xf3c   :  { %2773 = vsyncpa [#allocation15], 1 }
 0xf3d   :  { %2774 = vsyncpa [#allocation18], 1 }
 0xf3e   :  { %2775 = vsyncpa [#allocation21], 1 }
 0xf3f   :  { %2776 = vsyncpa [#allocation24], 1 }
 0xf40   :  { %2777 = vsyncpa [#allocation4], 1 }
 0xf41   :  { %2779 = vsyncpa [#allocation4 + $0x1], 1 }

</bundles_post_ra>
